<compile_context>
chip_gen: v6e
topology: v6e:2x2x1
jax: 0.10.0
libtpu: 0.0.40
codegen_flags: <defaults>
</compile_context>

<pallas_src>
import functools
import math

import jax
import jax.numpy as jnp
from jax.experimental import pallas as pl
from jax.experimental.pallas import tpu as pltpu


# ----------------------------------------------------------------------------
# Deterministic parameter / kernel construction (synthetic stand-ins)
# ----------------------------------------------------------------------------
def build_self_kernel_synth(in_order, out_order, band_limit=None):
    # TODO(synk): the original build_self_kernel builds analytic equivariance basis
    # matrices; here we build a deterministic synthetic basis with the same shape
    # [B_self, F_self, 2*out_order+1, 2*in_order+1].
    m_rep = 2 * in_order + 1
    n_rep = 2 * out_order + 1
    b, f = 2, 1
    idx = jnp.arange(b * f * n_rep * m_rep, dtype=jnp.float32).reshape(b, f, n_rep, m_rep)
    return jnp.cos(0.1 * idx)


def build_neigh_kernel_synth(in_order, out_order, band_limit=None):
    # Shape [B_neigh, F_neigh, 2*out_order+1, 2*in_order+1]
    m_rep = 2 * in_order + 1
    n_rep = 2 * out_order + 1
    f = (in_order + out_order + 1) if band_limit is None else (band_limit + 1)
    b = 4
    idx = jnp.arange(b * f * n_rep * m_rep, dtype=jnp.float32).reshape(b, f, n_rep, m_rep)
    return jnp.sin(0.05 * idx + 0.3)


def glorot_uniform(key, shape):
    # matches torch_geometric glorot: uniform(-a, a), a = sqrt(6 / (fan_in + fan_out))
    a = math.sqrt(6.0 / (shape[-1] + shape[-2]))
    return jax.random.uniform(key, shape, jnp.float32, -a, a)


def init_params(key, in_channels, out_channels, in_order, out_order, n_rings,
                band_limit=None):
    self_kernel = build_self_kernel_synth(in_order, out_order, band_limit)
    neigh_kernel = build_neigh_kernel_synth(in_order, out_order, band_limit)
    k1, k2 = jax.random.split(key)
    self_weight = glorot_uniform(k1, (self_kernel.shape[0], n_rings, out_channels, in_channels))
    neigh_weight = glorot_uniform(k2, (neigh_kernel.shape[0], n_rings, out_channels, in_channels))
    # Biases exist as parameters in the PyTorch module but are NOT used by forward().
    self_bias = jnp.zeros((out_channels,), jnp.float32)
    neigh_bias = jnp.zeros((out_channels,), jnp.float32)
    return dict(self_kernel=self_kernel, neigh_kernel=neigh_kernel,
                self_weight=self_weight, neigh_weight=neigh_weight,
                self_bias=self_bias, neigh_bias=neigh_bias)


# ----------------------------------------------------------------------------
# rep_act: parallel-transport of features by per-edge connection angle
# (order-m components rotate by m * theta; order 0 is invariant).
# ----------------------------------------------------------------------------
def rep_act(x, connection):
    # edge-major variant (E, C, M) -- used by the pure-JAX reference.
    e, c, m_rep = x.shape
    in_order = (m_rep - 1) // 2
    parts = [x[:, :, 0:1]]
    for m in range(1, in_order + 1):
        cm = jnp.cos(m * connection)[:, None]
        sm = jnp.sin(m * connection)[:, None]
        xr = x[:, :, 2 * m - 1]
        xi = x[:, :, 2 * m]
        parts.append((cm * xr - sm * xi)[:, :, None])
        parts.append((sm * xr + cm * xi)[:, :, None])
    return jnp.concatenate(parts, axis=-1)


def rep_act_feature_major(x_cols, connection, in_channels, m_rep):
    # feature-major variant (C*M, E) -- used to build the packed edge stream without an
    # extra (E, F) transpose materialization before the kernel.
    in_order = (m_rep - 1) // 2
    x3 = x_cols.reshape(in_channels, m_rep, -1)
    parts = [x3[:, 0:1, :]]
    for m in range(1, in_order + 1):
        cm = jnp.cos(m * connection)[None, :]
        sm = jnp.sin(m * connection)[None, :]
        xr = x3[:, 2 * m - 1, :]
        xi = x3[:, 2 * m, :]
        parts.append((cm * xr - sm * xi)[:, None, :])
        parts.append((sm * xr + cm * xi)[:, None, :])
    return jnp.concatenate(parts, axis=1).reshape(in_channels * m_rep, -1)


def _round_up(a, b):
    return ((a + b - 1) // b) * b


# ----------------------------------------------------------------------------
# Pallas kernel (feature-major / lane-dense, single packed edge-stream operand):
#   stage 1 (MXU):  z = blockdiag(T_neigh, T_self) @ [x_j_transported ; x_i]
#   stage 2 (VPU):  y = sum_fr p[fr] * z[fr]   (contraction over (freq, ring))
#   stage 3 (MXU):  scores_T = HM @ (y_src * y_dst)   per-head sum, 1/sqrt(d_k) folded in
# ----------------------------------------------------------------------------
def _eman_att_kernel(frn, frs, in_dim, ed_ref, tbd_ref, hm_ref, out_ref):
    outp = hm_ref.shape[1]        # out_rep dim padded to a multiple of 8 (sublane aligned)
    te = ed_ref.shape[1]
    two_in = 2 * in_dim

    ed = ed_ref[...]              # (2*IN + FRN + FRS, TE) packed: [x_j_t ; x_i ; pn ; ps]

    # Stage 1: ONE block-diagonal MXU matmul produces both branches stacked:
    #   rows [0, FRN*OUTP)               = zn (neighbour branch, uses transported x_j)
    #   rows [FRN*OUTP, (FRN+FRS)*OUTP)  = zs (self branch, uses x_i)
    z = jnp.dot(tbd_ref[...], ed[0:two_in, :], preferred_element_type=jnp.float32)

    # Stage 2: per-edge contraction over (freq, ring); aligned OUTP-row slices of z so the
    # full z never has to stay live in vregs (don't regress this when restructuring).
    # TODO(synk): on v7x a stride-0 sublane-broadcast load (pl.ds(row, outp, stride=0))
    # of the pn/ps row would ride the spare vector-load slot instead of a VPU broadcast.
    y_dst = jnp.zeros((outp, te), jnp.float32)
    for f in range(frn):          # static unroll
        y_dst = y_dst + ed[two_in + f:two_in + f + 1, :] * z[f * outp:(f + 1) * outp, :]
    y_src = jnp.zeros((outp, te), jnp.float32)
    zs_off = frn * outp
    for f in range(frs):
        y_src = y_src + (ed[two_in + frn + f:two_in + frn + f + 1, :]
                         * z[zs_off + f * outp:zs_off + (f + 1) * outp, :])

    # Stage 3: per-head sum via constant head matrix (1/sqrt(d_k) pre-folded); lane-dense
    # (n_heads, TE) store.
    out_ref[...] = jnp.dot(hm_ref[...], y_src * y_dst, preferred_element_type=jnp.float32)


# ----------------------------------------------------------------------------
# Wrapper (glue): gathers, weight folding, pallas_call, segment softmax
# ----------------------------------------------------------------------------
def eman_att_forward(x, edge_index, precomp_neigh, precomp_self, connection, params,
                     n_heads=2, tile_edges=2048):
    self_kernel = params["self_kernel"]
    neigh_kernel = params["neigh_kernel"]
    self_weight = params["self_weight"]
    neigh_weight = params["neigh_weight"]

    n_nodes, in_channels, m_rep = x.shape
    out_channels = self_weight.shape[2]
    n_rep = self_kernel.shape[2]
    n_rings = self_weight.shape[1]
    f_n = neigh_kernel.shape[1]
    f_s = self_kernel.shape[1]
    assert f_n <= precomp_neigh.shape[1], "Neighbor kernel band-limit > precompute"
    precomp_neigh = precomp_neigh[:, :f_n]

    e = edge_index.shape[1]
    src = edge_index[0]
    dst = edge_index[1]

    in_dim = in_channels * m_rep
    out_dim = out_channels * n_rep
    assert out_dim % n_heads == 0, "heads must evenly split the flattened output rep"
    d_k = out_dim // n_heads
    outp = _round_up(out_dim, 8)          # out-rep dim padded to sublane multiple
    frn = f_n * n_rings
    frs = f_s * n_rings

    # ---- edge-independent constants ------------------------------------------------
    # Fold (basis x weight) into T[fr, J=(j,m), O=(i,n)] = sum_b K[b,f,n,m] * W[b,r,i,j]
    t_neigh = jnp.einsum("bfnm,brij->frjmin", neigh_kernel, neigh_weight).reshape(
        frn, in_dim, out_dim)
    t_self = jnp.einsum("bfnm,brij->frjmin", self_kernel, self_weight).reshape(
        frs, in_dim, out_dim)

    def to_stage1(t):  # (FR, IN, OUT) -> (FR*OUTP, IN), zero-padded on the OUT axis
        t = jnp.transpose(t, (0, 2, 1))
        t = jnp.pad(t, ((0, 0), (0, outp - out_dim), (0, 0)))
        return t.reshape(-1, in_dim)

    tn_s1 = to_stage1(t_neigh)            # (FRN*OUTP, IN)
    ts_s1 = to_stage1(t_self)             # (FRS*OUTP, IN)

    # Block-diagonal stage-1 matrix: one MXU weight load / matmul for both branches.
    t_bd = jnp.zeros(((frn + frs) * outp, 2 * in_dim), jnp.float32)
    t_bd = t_bd.at[:frn * outp, :in_dim].set(tn_s1)
    t_bd = t_bd.at[frn * outp:, in_dim:].set(ts_s1)
    # TODO(synk): bf16 for t_bd + the x rows of the packed stream would halve the dominant
    # HBM bytes on v5e/v6e, but breaks the 1e-3 allclose tolerance; kept f32 here.

    # Constant head matrix: 0/1 head membership with 1/sqrt(d_k) folded in, padded cols 0.
    # Invariant: heads are contiguous blocks of the flattened (out_channels, n_rep) axis,
    # matching reshape(E, n_heads, -1) in the reference.
    o_idx = jnp.arange(outp)
    hm = ((o_idx[None, :] // d_k == jnp.arange(n_heads)[:, None]) &
          (o_idx[None, :] < out_dim)).astype(jnp.float32) / math.sqrt(d_k)   # (H, OUTP)

    # ---- packed feature-major edge streams (one operand -> one DMA per grid step) ----
    # TODO(synk): the node gather + rep_act stay in XLA; a further step would keep x
    # resident in VMEM and gather/rotate in-kernel (~8x less edge HBM traffic).
    xf = x.reshape(n_nodes, in_dim).T                     # (IN, N) feature-major node feats
    xi_cols = xf[:, src]                                  # (IN, E)
    xjt_cols = rep_act_feature_major(xf[:, dst], connection, in_channels, m_rep)  # (IN, E)
    pn_cols = precomp_neigh.reshape(e, frn).T             # (FRN, E)
    ps_cols = precomp_self.reshape(e, frs).T              # (FRS, E)
    packed = jnp.concatenate([xjt_cols, xi_cols, pn_cols, ps_cols], axis=0)
    rows = packed.shape[0]                                # 2*IN + FRN + FRS

    # Big tiles amortize per-step pipeline overhead; keep >= 2 tiles when the edge list
    # allows it so the "parallel" grid axis can shard across v7x's two TensorCores.
    tile = min(tile_edges, max(512, _round_up((e + 1) // 2, 128)))
    e_pad = _round_up(e, tile)
    packed = jnp.pad(packed, ((0, 0), (0, e_pad - e)))

    grid = (e_pad // tile,)
    scores_t = pl.pallas_call(
        functools.partial(_eman_att_kernel, frn, frs, in_dim),
        out_shape=jax.ShapeDtypeStruct((n_heads, e_pad), jnp.float32),
        grid=grid,
        in_specs=[
            # NOTE: feature dims (rows, 2*in_dim, n_heads) are the FULL array extents,
            # which is what satisfies the (8,128) block rule -- do not tile them.
            pl.BlockSpec((rows, tile), lambda i: (0, i)),                     # packed edges
            pl.BlockSpec(((frn + frs) * outp, 2 * in_dim), lambda i: (0, 0)),  # block-diag T
            pl.BlockSpec((n_heads, outp), lambda i: (0, 0)),                   # head matrix
        ],
        out_specs=pl.BlockSpec((n_heads, tile), lambda i: (0, i)),             # lane-dense
        compiler_params=pltpu.CompilerParams(dimension_semantics=("parallel",)),
    )(packed, t_bd, hm)

    prods = scores_t[:, :e].T            # (E, H) unnormalized attention scores

    # TODO(synk): segment softmax / degree use data-dependent scatter by edge_index
    # (no clean tiled Pallas equivalent); implemented with jax.ops.segment_* here.
    seg = src
    seg_max = jax.ops.segment_max(prods, seg, num_segments=n_nodes)
    p = jnp.exp(prods - seg_max[seg])
    seg_sum = jax.ops.segment_sum(p, seg, num_segments=n_nodes)
    soft = p / (seg_sum[seg] + 1e-16)
    deg = jax.ops.segment_sum(jnp.ones((e,), jnp.float32), seg, num_segments=n_nodes)[seg]
    return deg[:, None] * soft


# ----------------------------------------------------------------------------
# Pure-JAX reference (mirrors the PyTorch forward) for verification
# ----------------------------------------------------------------------------
def reference_attention(x, edge_index, precomp_neigh, precomp_self, connection,
                        params, n_heads=2):
    self_kernel = params["self_kernel"]
    neigh_kernel = params["neigh_kernel"]
    self_weight = params["self_weight"]
    neigh_weight = params["neigh_weight"]
    n_nodes = x.shape[0]
    f_n = neigh_kernel.shape[1]
    pn = precomp_neigh[:, :f_n]
    src, dst = edge_index[0], edge_index[1]
    x_i = x[src]
    x_j_t = rep_act(x[dst], connection)
    y_dst = jnp.einsum("ejm,efr,bfnm,brij->ein", x_j_t, pn, neigh_kernel, neigh_weight)
    y_src = jnp.einsum("ejm,efr,bfnm,brij->ein", x_i, precomp_self, self_kernel, self_weight)
    e = x_i.shape[0]
    y_dst = y_dst.reshape(e, n_heads, -1)
    y_src = y_src.reshape(e, n_heads, -1)
    d_k = y_dst.shape[-1]
    prods = (y_src * y_dst).sum(axis=2) / math.sqrt(d_k)
    seg = src
    seg_max = jax.ops.segment_max(prods, seg, num_segments=n_nodes)
    p = jnp.exp(prods - seg_max[seg])
    seg_sum = jax.ops.segment_sum(p, seg, num_segments=n_nodes)
    soft = p / (seg_sum[seg] + 1e-16)
    deg = jax.ops.segment_sum(jnp.ones((e,), jnp.float32), seg, num_segments=n_nodes)[seg]
    return deg[:, None] * soft


if __name__ == "__main__":
    in_channels, out_channels = 4, 4
    in_order, out_order = 1, 1
    n_rings, n_heads = 2, 2
    n_nodes, n_edges = 64, 2000          # E not a multiple of the tile -> exercises padding
    m_rep = 2 * in_order + 1
    f_neigh = in_order + out_order + 1   # synthetic neigh-kernel freq count
    f_self = 1

    key = jax.random.PRNGKey(0)
    kp, kx, ke, kpn, kps, kc = jax.random.split(key, 6)

    params = init_params(kp, in_channels, out_channels, in_order, out_order, n_rings)
    x = jax.random.normal(kx, (n_nodes, in_channels, m_rep), jnp.float32)
    edge_index = jax.random.randint(ke, (2, n_edges), 0, n_nodes, dtype=jnp.int32)
    # precompute carries one extra frequency to exercise the band-limit slice
    precomp_neigh = jax.random.normal(kpn, (n_edges, f_neigh + 1, n_rings), jnp.float32)
    precomp_self = jax.random.normal(kps, (n_edges, f_self, n_rings), jnp.float32)
    connection = jax.random.uniform(kc, (n_edges,), jnp.float32, 0.0, 2.0 * math.pi)

    att = eman_att_forward(x, edge_index, precomp_neigh, precomp_self, connection,
                           params, n_heads=n_heads, tile_edges=2048)
    att = jax.block_until_ready(att)

    ref = reference_attention(x, edge_index, precomp_neigh, precomp_self, connection,
                              params, n_heads=n_heads)
    assert att.shape == (n_edges, n_heads)
    assert jnp.allclose(att, ref, atol=1e-3, rtol=1e-3), "mismatch vs JAX reference"
    print("KERNEL_OK")
</pallas_src>

<mosaic_0001>
module attributes {stable_mosaic.version = 11 : i64} {
  func.func @_eman_att_kernel(%arg0: i32, %arg1: memref<32x1024xf32, #tpu.memory_space<vmem>>, %arg2: memref<128x24xf32, #tpu.memory_space<vmem>>, %arg3: memref<2x16xf32, #tpu.memory_space<vmem>>, %arg4: memref<2x1024xf32, #tpu.memory_space<vmem>>) attributes {dimension_semantics = [#tpu.dimension_semantics<parallel>], iteration_bounds = array<i64: 2>, scalar_prefetch = 0 : i64, scratch_operands = 0 : i64, tpu.core_type = #tpu.core_type<tc>, window_params = [{transform_indices = @transform_0, window_bounds = array<i64: 32, 1024>}, {pipeline_mode = #tpu.pipeline_mode<synchronous>, transform_indices = @transform_1, window_bounds = array<i64: 128, 24>}, {pipeline_mode = #tpu.pipeline_mode<synchronous>, transform_indices = @transform_2, window_bounds = array<i64: 2, 16>}, {transform_indices = @transform_3, window_bounds = array<i64: 2, 1024>}]} {
    %c0 = arith.constant 0 : index
    %c0_0 = arith.constant 0 : index
    %0 = vector.load %arg1[%c0, %c0_0] : memref<32x1024xf32, #tpu.memory_space<vmem>>, vector<32x1024xf32>
    %c0_1 = arith.constant 0 : index
    %c0_2 = arith.constant 0 : index
    %1 = vector.load %arg2[%c0_1, %c0_2] : memref<128x24xf32, #tpu.memory_space<vmem>>, vector<128x24xf32>
    %2 = vector.extract_strided_slice %0 {offsets = [0, 0], sizes = [24, 1024], strides = [1, 1]} : vector<32x1024xf32> to vector<24x1024xf32>
    %cst = arith.constant dense<0.000000e+00> : vector<128x1024xf32>
    %3 = tpu.matmul %1, %2, %cst {dimension_numbers = #tpu.dot_dimension_numbers<[1], [0], [0], [1], [0, 0, 1, 1], [], []>} : vector<128x24xf32>, vector<24x1024xf32>, vector<128x1024xf32> -> vector<128x1024xf32>
    %cst_3 = arith.constant 0.000000e+00 : f32
    %4 = vector.broadcast %cst_3 : f32 to vector<16x1024xf32>
    %5 = vector.extract_strided_slice %0 {offsets = [24, 0], sizes = [1, 1024], strides = [1, 1]} : vector<32x1024xf32> to vector<1x1024xf32>
    %6 = vector.extract_strided_slice %3 {offsets = [0, 0], sizes = [16, 1024], strides = [1, 1]} : vector<128x1024xf32> to vector<16x1024xf32>
    %7 = vector.broadcast %5 : vector<1x1024xf32> to vector<16x1024xf32>
    %8 = arith.mulf %7, %6 : vector<16x1024xf32>
    %9 = arith.addf %4, %8 : vector<16x1024xf32>
    %10 = vector.extract_strided_slice %0 {offsets = [25, 0], sizes = [1, 1024], strides = [1, 1]} : vector<32x1024xf32> to vector<1x1024xf32>
    %11 = vector.extract_strided_slice %3 {offsets = [16, 0], sizes = [16, 1024], strides = [1, 1]} : vector<128x1024xf32> to vector<16x1024xf32>
    %12 = vector.broadcast %10 : vector<1x1024xf32> to vector<16x1024xf32>
    %13 = arith.mulf %12, %11 : vector<16x1024xf32>
    %14 = arith.addf %9, %13 : vector<16x1024xf32>
    %15 = vector.extract_strided_slice %0 {offsets = [26, 0], sizes = [1, 1024], strides = [1, 1]} : vector<32x1024xf32> to vector<1x1024xf32>
    %16 = vector.extract_strided_slice %3 {offsets = [32, 0], sizes = [16, 1024], strides = [1, 1]} : vector<128x1024xf32> to vector<16x1024xf32>
    %17 = vector.broadcast %15 : vector<1x1024xf32> to vector<16x1024xf32>
    %18 = arith.mulf %17, %16 : vector<16x1024xf32>
    %19 = arith.addf %14, %18 : vector<16x1024xf32>
    %20 = vector.extract_strided_slice %0 {offsets = [27, 0], sizes = [1, 1024], strides = [1, 1]} : vector<32x1024xf32> to vector<1x1024xf32>
    %21 = vector.extract_strided_slice %3 {offsets = [48, 0], sizes = [16, 1024], strides = [1, 1]} : vector<128x1024xf32> to vector<16x1024xf32>
    %22 = vector.broadcast %20 : vector<1x1024xf32> to vector<16x1024xf32>
    %23 = arith.mulf %22, %21 : vector<16x1024xf32>
    %24 = arith.addf %19, %23 : vector<16x1024xf32>
    %25 = vector.extract_strided_slice %0 {offsets = [28, 0], sizes = [1, 1024], strides = [1, 1]} : vector<32x1024xf32> to vector<1x1024xf32>
    %26 = vector.extract_strided_slice %3 {offsets = [64, 0], sizes = [16, 1024], strides = [1, 1]} : vector<128x1024xf32> to vector<16x1024xf32>
    %27 = vector.broadcast %25 : vector<1x1024xf32> to vector<16x1024xf32>
    %28 = arith.mulf %27, %26 : vector<16x1024xf32>
    %29 = arith.addf %24, %28 : vector<16x1024xf32>
    %30 = vector.extract_strided_slice %0 {offsets = [29, 0], sizes = [1, 1024], strides = [1, 1]} : vector<32x1024xf32> to vector<1x1024xf32>
    %31 = vector.extract_strided_slice %3 {offsets = [80, 0], sizes = [16, 1024], strides = [1, 1]} : vector<128x1024xf32> to vector<16x1024xf32>
    %32 = vector.broadcast %30 : vector<1x1024xf32> to vector<16x1024xf32>
    %33 = arith.mulf %32, %31 : vector<16x1024xf32>
    %34 = arith.addf %29, %33 : vector<16x1024xf32>
    %cst_4 = arith.constant 0.000000e+00 : f32
    %35 = vector.broadcast %cst_4 : f32 to vector<16x1024xf32>
    %36 = vector.extract_strided_slice %0 {offsets = [30, 0], sizes = [1, 1024], strides = [1, 1]} : vector<32x1024xf32> to vector<1x1024xf32>
    %37 = vector.extract_strided_slice %3 {offsets = [96, 0], sizes = [16, 1024], strides = [1, 1]} : vector<128x1024xf32> to vector<16x1024xf32>
    %38 = vector.broadcast %36 : vector<1x1024xf32> to vector<16x1024xf32>
    %39 = arith.mulf %38, %37 : vector<16x1024xf32>
    %40 = arith.addf %35, %39 : vector<16x1024xf32>
    %41 = vector.extract_strided_slice %0 {offsets = [31, 0], sizes = [1, 1024], strides = [1, 1]} : vector<32x1024xf32> to vector<1x1024xf32>
    %42 = vector.extract_strided_slice %3 {offsets = [112, 0], sizes = [16, 1024], strides = [1, 1]} : vector<128x1024xf32> to vector<16x1024xf32>
    %43 = vector.broadcast %41 : vector<1x1024xf32> to vector<16x1024xf32>
    %44 = arith.mulf %43, %42 : vector<16x1024xf32>
    %45 = arith.addf %40, %44 : vector<16x1024xf32>
    %c0_5 = arith.constant 0 : index
    %c0_6 = arith.constant 0 : index
    %46 = vector.load %arg3[%c0_5, %c0_6] : memref<2x16xf32, #tpu.memory_space<vmem>>, vector<2x16xf32>
    %47 = arith.mulf %45, %34 : vector<16x1024xf32>
    %cst_7 = arith.constant dense<0.000000e+00> : vector<2x1024xf32>
    %48 = tpu.matmul %46, %47, %cst_7 {dimension_numbers = #tpu.dot_dimension_numbers<[1], [0], [0], [1], [0, 0, 1, 1], [], []>} : vector<2x16xf32>, vector<16x1024xf32>, vector<2x1024xf32> -> vector<2x1024xf32>
    %c0_8 = arith.constant 0 : index
    %c0_9 = arith.constant 0 : index
    %49 = vector.load %arg4[%c0_8, %c0_9] : memref<2x1024xf32, #tpu.memory_space<vmem>>, vector<2x1024xf32>
    tpu.vector_store %arg4[%c0_8, %c0_9], %48 {strides = array<i32>} : memref<2x1024xf32, #tpu.memory_space<vmem>>, vector<2x1024xf32>,
    return
  }
  func.func @transform_0(%arg0: i32) -> (i32, i32) {
    %c0_i32 = arith.constant 0 : i32
    %c0_i32_0 = arith.constant 0 : i32
    return %c0_i32, %arg0 : i32, i32
  }
  func.func @transform_1(%arg0: i32) -> (i32, i32) {
    %c0_i32 = arith.constant 0 : i32
    %c0_i32_0 = arith.constant 0 : i32
    %c0_i32_1 = arith.constant 0 : i32
    return %c0_i32, %c0_i32_0 : i32, i32
  }
  func.func @transform_2(%arg0: i32) -> (i32, i32) {
    %c0_i32 = arith.constant 0 : i32
    %c0_i32_0 = arith.constant 0 : i32
    %c0_i32_1 = arith.constant 0 : i32
    return %c0_i32, %c0_i32_0 : i32, i32
  }
  func.func @transform_3(%arg0: i32) -> (i32, i32) {
    %c0_i32 = arith.constant 0 : i32
    %c0_i32_0 = arith.constant 0 : i32
    return %c0_i32, %arg0 : i32, i32
  }
}

</mosaic_0001>

<bundles_post_ra>
// kernel: tpu_custom_call.1
= control target key start
LH: loop header
LB: loop body
LE: loop exit
PB: predicated region body
PF: predicated region fallthrough
CT: control target
= control target key end

     0   :  { %8 = vsyncpa [#allocation3], 0  ;;  %s3141_s0 = inlined_call_operand.hbm [shape: f32[32,2048], index: 0, kind: input, shape index: {}]   ;;  %s3142_s1 = inlined_call_operand.vmem [shape: f32[128,24], index: 1, kind: input, shape index: {}]   ;;  %s3143_s2 = inlined_call_operand.vmem [shape: f32[2,16], index: 2, kind: input, shape index: {}]   ;;  %s3144_s3 = inlined_call_operand.hbm [shape: f32[2,2048], index: 3, kind: output, shape index: {}]  }
   0x1   :  { %10 = vsyncpa [#allocation3 + $0x1], 0 }
   0x2   :  { %11 = vsyncpa [#allocation4], 0 }
   0x3   :  { %13 = vsyncpa [#allocation4 + $0x1], 0  ;;  %s2136_s12 = smov 0   ;;  %s2138_s13 = smov 0  }
   0x4   :  { %s2140_s14 = smov 0   ;;  %s2142_s15 = smov 0  }
   0x5 LB: > { %s2157_s16 = sadd.s32 4294967295, %s2107_s15   ;;  %s1880_s17 = sadd.s32 4294967294, %s2107_s15   ;;  %s2107_s15 = sphi %s2142_s15, %s3309_s15   ;;  %s2103_s14 = sphi %s2140_s14, %s3308_s14   ;;  %s2099_s13 = sphi %s2138_s13, %s3307_s13   ;;  %s2095_s12 = sphi %s2136_s12, %s3306_s12  }
   0x6   : > { %s2161_s18 = sadd.s32 1, %s2107_s15   ;;  %s26_s19 = sadd.s32 1, %s2103_s14 }
   0x7   : > { %s23_s20 = ssub.s32 %s2107_s15, %s2161_s18  ;;  %p33_p0 = scmp.ne.s32.totalorder %s2103_s14, %s2099_s13 }
   0x8   : > { %p24_p1 = scmp.eq.s32.totalorder %s23_s20, 0  ;;  %p34_p2 = scmp.eq.s32.totalorder %s2107_s15, 0 }
   0x9   : > { %p39_p3 = scmp.ne.s32.totalorder %s2099_s13, %s2095_s12  ;;  %p40_p4 = scmp.eq.s32.totalorder %s2157_s16, 0 }
   0xa   : > { %s2173_s21 = scalar_select %p24_p1, %s2103_s14, %s26_s19  }
   0xb   : > { %p2175_p5 = por %p34_p2, %p33_p0  ;;  %p2179_p6 = por %p40_p4, %p39_p3 }
   0xc   : > { %p105_p7 = scmp.eq.s32.totalorder %s2157_s16, 1  ;;  %p111_p8 = scmp.eq.s32.totalorder %s1880_s17, 1 }
   0xd   : > { %s3196_s23 = scalar_select %p2179_p6, 1, 0 }
   0xe   : > { %p1976_p10 = scmp.lt.s32.totalorder %s2107_s15, 2  ;;  %p2186_p11 = por %p105_p7, %p33_p0 }
   0xf   : > { %p2190_p12 = por %p111_p8, %p39_p3  ;;  %s137_s26 = sand.u32 1, %s2103_s14  }
  0x10   : > { %s3197_s24 = scalar_select %p2186_p11, 1, 0 }
  0x11   : > { %s3198_s25 = scalar_select %p2190_p12, 1, 0 }
  0x12   : > { %s1962_s27 = sshll.u32 %s2107_s15, 10  ;;  %s1883_s28 = sshll.u32 %s137_s26, 8 }
  0x13   : > { %s2199_s4 = scalar_lea.hbm %s3141_s0, %s1962_s27  ;;  %s141_s5 = scalar_lea.vmem [#allocation2], %s1883_s28 }
  0x14   : > { %s148_s6 = sshll.u32 %s141_s5, 4  ;;  %p2203_p13 = pnand %p1976_p10, %p2175_p5  ;;  %s2207_s6 = int_to_ptr.vmem [resolvable:$true] %s148_s6 }
  0x15   : > { %s2210_s8 = scalar_lea.sflag [#allocation3], %s137_s26  ;;  %s2015_s9 = scalar_lea.hbm %s2199_s4, 4096 }
  0x16   : > { %p2016_p1 = scmp.ne.s32.totalorder %s2199_s4, %s2015_s9  ;;  %p2017_p2 = pneg %p2203_p13 }
  0x17   : > { %s2020_s17 = scalar_lea.hbm %s3141_s0, 8192  ;;  %p2021_p5 = scmp.lt.s32.totalorder %s2199_s4, %s3141_s0 }
  0x18   : > { %p2018_p3 = pnand %p2017_p2, %p2016_p1  ;;  %p2022_p7 = scmp.lt.s32.totalorder %s2020_s17, %s2015_s9 }
  0x1a   : > { %p2019_p4 = pneg %p2018_p3  ;;  %p2023_p8 = por %p2022_p7, %p2021_p5 }
  0x1c   : > { %p2024_p10 = pnand %p2023_p8, %p2019_p4 }
  0x1e   : > { %2027 = shalt.err (!%p2024_p10)
}
  0x1f   : > { %s2028_s22 = scalar_lea.vmem %s2207_s6, 4096  ;;  %s2109_s26 = smov [#allocation2]  }
  0x20   : > { %p2029_p9 = scmp.ne.s32.totalorder %s2207_s6, %s2028_s22  ;;  %s2033_s27 = sshll.u32 %s2109_s26, 4  ;;  %s2034_s27 = int_to_ptr.vmem [resolvable:$false] %s2033_s27 }
  0x21   : > { %s2035_s28 = scalar_lea.vmem %s2034_s27, 8192  ;;  %p2036_p3 = scmp.lt.s32.totalorder %s2207_s6, %s2034_s27 }
  0x22   : > { %p2031_p0 = pnand %p2029_p9, %p2017_p2  ;;  %p2037_p12 = scmp.lt.s32.totalorder %s2035_s28, %s2028_s22 }
  0x24   : > { %p2032_p1 = pneg %p2031_p0  ;;  %p2038_p11 = por %p2037_p12, %p2036_p3 }
  0x26   : > { %p2039_p6 = pnand %p2038_p11, %p2032_p1 }
  0x28   : > { %2042 = shalt.err (!%p2039_p6)
}
  0x29   : > { %s2110_s29 = smov 2048   ;;  %s2111_s30 = smov 1024  }
  0x2a   : > { %s2112_s5 = smov 64   ;;  %p156_p9 = scmp.lt.s32.totalorder %s2107_s15, 3 }
  0x2b   : > { %1971 = dma.hbm_to_vmem [thread:$0]  (!%p2203_p13), %s2199_s4, 4096, %s2207_s6, %s2210_s8, %s2110_s29, %s2111_s30, %s2112_s5  }
  0x2c   : > { %p3200_p0 = scmp.ge.s32.totalorder %s2107_s15, 1 }
  0x2e   : > { %p157_p2 = pnand %p3200_p0, %p156_p9 }
  0x30   : > { %160 = sbr.rel (%p157_p2) target bundleno = 610 (0x262), region = 32 }
  0x35   : > { %s2235_s9 = sand.u32 1, %s2099_s13   ;;  %p3201_p6 = scmp.ne.s32.totalorder %s3196_s23, 0 }
  0x36   : > { %s1887_s10 = sshll.u32 %s2235_s9, 8  ;;  %s163_s11 = scalar_lea.sflag [#allocation3], %s2235_s9 }
  0x37   : > { %s2239_s17 = scalar_lea.vmem [#allocation2], %s1887_s10 }
  0x38   : > { %2086 = dma.done.wait (%p3201_p6), %s163_s11, 4096  }
  0x39   : > { %2088 = vsyncadd (%p3201_p6), %s163_s11, 4294963200  ;;  %v3147_v0 = vmov 0.0   ;;  %v208_v1 = vld [vmem:[%s2239_s17 + $0x88] sm:$0xff]  ;;  %v210_v2 = vld [vmem:[%s2239_s17 + $0x98] sm:$0xff]  ;;  %vm239_vm0 = vcmask 195584   ;;  %v932_v61 = vlaneseq  ;;  %vm1461_vm1 = vcmask 130048  }
  0x3a   : > { %352 = vmatprep.mubr.f32.mxu0 %v3147_v0  ;;  %513 = vmatprep.mubr.f32.mxu1 %v3147_v0  ;;  %v207_v3 = vld [vmem:[%s2239_s17 + $0x80] sm:$0xff]  ;;  %v209_v4 = vld [vmem:[%s2239_s17 + $0x90] sm:$0xff]  ;;  %v200_v5 = vld [vmem:[%s2239_s17 + $0x48] sm:$0xff]  ;;  %s1963_s7 = sshll.u32 %s2157_s16, 8  ;;  %s1796_s26 = scalar_lea.sflag [#allocation4], %s2235_s9 }
  0x3b   : > { %314 = vmatprep.subr.mxu0 %v208_v1  ;;  %475 = vmatprep.subr.mxu1 %v210_v2  ;;  %v202_v6 = vld [vmem:[%s2239_s17 + $0x58] sm:$0xff]  ;;  %v199_v7 = vld [vmem:[%s2239_s17 + $0x40] sm:$0xff]  ;;  %v201_v8 = vld [vmem:[%s2239_s17 + $0x50] sm:$0xff]  ;;  %s1808_s22 = scalar_lea.hbm %s3144_s3, %s1963_s7  ;;  %p3303_p12 = scmp.ne.s32.totalorder %s3197_s24, 0 }
  0x3c   : > { %315 = vmatpush1.msra.mxu0 %v207_v3  ;;  %476 = vmatpush1.msra.mxu1 %v209_v4  ;;  %v192_v9 = vld [vmem:[%s2239_s17 + $0x8] sm:$0xff]  ;;  %v194_v10 = vld [vmem:[%s2239_s17 + $0x18] sm:$0xff]  ;;  %v191_v11 = vld [vmem:[%s2239_s17] sm:$0xff]  ;;  %v2591_v3 = vshrl.u32 %v932_v61, 7  ;;  %s2115_s28 = smov [#allocation5]  }
  0x3d   : > { %316 = vmatprep.subr.mxu0 %v200_v5  ;;  %477 = vmatprep.subr.mxu1 %v202_v6  ;;  %v193_v12 = vld [vmem:[%s2239_s17 + $0x10] sm:$0xff]  ;;  %v2262_v13 = vld [vmem:[%s3142_s1] sm:$0xff]  ;;  %v212_v14 = vld [vmem:[%s2239_s17 + $0xa8] sm:$0xff]  ;;  %s2047_s29 = sshll.u32 %s2115_s28, 4  ;;  %s2048_s29 = int_to_ptr.vmem [resolvable:$false] %s2047_s29 }
  0x3e   : > { %317 = vmatpush1.msra.mxu0 %v199_v7  ;;  %478 = vmatpush1.msra.mxu1 %v201_v8  ;;  %v214_v15 = vld [vmem:[%s2239_s17 + $0xb8] sm:$0xff]  ;;  %v211_v16 = vld [vmem:[%s2239_s17 + $0xa0] sm:$0xff]  ;;  %v213_v17 = vld [vmem:[%s2239_s17 + $0xb0] sm:$0xff]  ;;  %3202 = vst [vmem:[#allocation8_spill] sm:$0xff] %v2591_v3  ;;  %s2049_s16 = scalar_lea.vmem %s2048_s29, 512 }
  0x3f   : > { %318 = vmatprep.subr.mxu0 %v192_v9  ;;  %479 = vmatprep.subr.mxu1 %v194_v10  ;;  %v2275_v18 = vld [vmem:[%s3142_s1 + $0x8] sm:$0xff]  ;;  %v206_v20 = vld [vmem:[%s2239_s17 + $0x78] sm:$0xff]  ;;  %v203_v21 = vld [vmem:[%s2239_s17 + $0x60] sm:$0xff]  ;;  %v2603_v9 = vsub.s32 0, %v2591_v3 }
  0x40   : > { %319 = vmatpush1.msra.mxu0 %v191_v11  ;;  %480 = vmatpush1.msra.mxu1 %v193_v12  ;;  %v204_v19 = vld [vmem:[%s2239_s17 + $0x68] sm:$0xff]  ;;  %v205_v22 = vld [vmem:[%s2239_s17 + $0x70] sm:$0xff]  ;;  %v198_v25 = vld [vmem:[%s2239_s17 + $0x38] sm:$0xff] }
  0x41   : > { %1889 = vmatmul.mubr.msk.f32.vlgmr.msra.gmra.mxu0 %vm239_vm0, %v2262_v13  ;;  %1905 = vmatmul.mubr.msk.f32.vlgmr.msra.gmra.mxu1 %vm239_vm0, %v2262_v13  ;;  %v2292_v23 = vld [vmem:[%s3142_s1 + $0x10] sm:$0xff]  ;;  %v196_v24 = vld [vmem:[%s2239_s17 + $0x28] sm:$0xff]  ;;  %v195_v26 = vld [vmem:[%s2239_s17 + $0x20] sm:$0xff]  ;;  %3203 = vst [vmem:[#allocation9_spill] sm:$0xff] %v2603_v9 }
  0x42   : > { %636 = vmatprep.subr.mxu0 %v212_v14  ;;  %797 = vmatprep.subr.mxu1 %v214_v15  ;;  %v197_v27 = vld [vmem:[%s2239_s17 + $0x30] sm:$0xff]  ;;  %v2307_v28 = vld [vmem:[%s3142_s1 + $0x18] sm:$0xff]  ;;  %v2318_v29 = vld [vmem:[%s3142_s1 + $0x20] sm:$0xff] }
  0x43   : > { %637 = vmatpush1.msra.mxu0 %v211_v16  ;;  %798 = vmatpush1.msra.mxu1 %v213_v17  ;;  %v2329_v30 = vld [vmem:[%s3142_s1 + $0x28] sm:$0xff]  ;;  %v2340_v31 = vld [vmem:[%s3142_s1 + $0x30] sm:$0xff]  ;;  %v2351_v32 = vld [vmem:[%s3142_s1 + $0x38] sm:$0xff]  ;;  %v2616_v16 = vsub.s32 2, %v2591_v3  ;;  %v2619_v17 = vsub.s32 3, %v2591_v3 }
  0x44   : > { %358 = vmatprep.mubr.f32.mxu0 %v3147_v0  ;;  %519 = vmatprep.mubr.f32.mxu1 %v3147_v0  ;;  %v2362_v33 = vld [vmem:[%s3142_s1 + $0x40] sm:$0xff]  ;;  %v2373_v34 = vld [vmem:[%s3142_s1 + $0x48] sm:$0xff]  ;;  %v2384_v35 = vld [vmem:[%s3142_s1 + $0x50] sm:$0xff] }
  0x45   : > { %1890 = vmatmul.mubr.msk.f32.gmra.mxu0 %vm239_vm0, %v2275_v18  ;;  %1906 = vmatmul.mubr.msk.f32.gmra.mxu1 %vm239_vm0, %v2275_v18  ;;  %v2395_v36 = vld [vmem:[%s3142_s1 + $0x58] sm:$0xff]  ;;  %v2406_v37 = vld [vmem:[%s3142_s1 + $0x60] sm:$0xff]  ;;  %v2417_v38 = vld [vmem:[%s3142_s1 + $0x68] sm:$0xff]  ;;  %3205 = vst [vmem:[#allocation11_spill] sm:$0xff] %v2616_v16 }
  0x46   : > { %364 = vmatprep.mubr.f32.mxu0 %v3147_v0  ;;  %525 = vmatprep.mubr.f32.mxu1 %v3147_v0  ;;  %v2428_v39 = vld [vmem:[%s3142_s1 + $0x70] sm:$0xff]  ;;  %v2439_v40 = vld [vmem:[%s3142_s1 + $0x78] sm:$0xff]  ;;  %v215_v8 = vld [vmem:[%s2239_s17 + $0xc0] sm:$0xff]  ;;  %3206 = vst [vmem:[#allocation12_spill] sm:$0xff] %v2619_v17 }
  0x47   : > { %638 = vmatprep.subr.mxu0 %v204_v19  ;;  %799 = vmatprep.subr.mxu1 %v206_v20  ;;  %v217_v10 = vld [vmem:[%s2239_s17 + $0xd0] sm:$0xff]  ;;  %v216_v11 = vld [vmem:[%s2239_s17 + $0xc8] sm:$0xff]  ;;  %v218_v12 = vld [vmem:[%s2239_s17 + $0xd8] sm:$0xff]  ;;  %v935_v20 = vrot.slane %v215_v8, %v2603_v9 }
  0x48   : > { %639 = vmatpush1.msra.mxu0 %v203_v21  ;;  %800 = vmatpush1.msra.mxu1 %v205_v22  ;;  %v943_v21 = vrot.slane %v217_v10, %v2603_v9  ;;  %v939_v22 = vrot.slane %v216_v11, %v2603_v9  ;;  %v2661_v61 = vrot.slane %v216_v11, %v2619_v17 }
  0x49   : > { %1891 = vmatmul.mubr.msk.f32.gmra.mxu0 %vm239_vm0, %v2292_v23  ;;  %1907 = vmatmul.mubr.msk.f32.gmra.mxu1 %vm239_vm0, %v2292_v23 }
  0x4a   : > { %370 = vmatprep.mubr.f32.mxu0 %v3147_v0  ;;  %531 = vmatprep.mubr.f32.mxu1 %v3147_v0 }
  0x4b   : > { %640 = vmatprep.subr.mxu0 %v196_v24  ;;  %801 = vmatprep.subr.mxu1 %v198_v25 }
  0x4c   : > { %641 = vmatpush1.msra.mxu0 %v195_v26  ;;  %802 = vmatpush1.msra.mxu1 %v197_v27 }
  0x4d   : > { %1892 = vmatmul.mubr.msk.f32.gmra.mxu0 %vm239_vm0, %v2307_v28  ;;  %1908 = vmatmul.mubr.msk.f32.gmra.mxu1 %vm239_vm0, %v2307_v28 }
  0x4e   : > { %376 = vmatprep.mubr.f32.mxu0 %v3147_v0  ;;  %537 = vmatprep.mubr.f32.mxu1 %v3147_v0 }
  0x51   : > { %1893 = vmatmul.mubr.msk.f32.gmra.mxu0 %vm239_vm0, %v2318_v29  ;;  %1909 = vmatmul.mubr.msk.f32.gmra.mxu1 %vm239_vm0, %v2318_v29 }
  0x52   : > { %382 = vmatprep.mubr.f32.mxu0 %v3147_v0  ;;  %543 = vmatprep.mubr.f32.mxu1 %v3147_v0 }
  0x55   : > { %1894 = vmatmul.mubr.msk.f32.gmra.mxu0 %vm239_vm0, %v2329_v30  ;;  %1910 = vmatmul.mubr.msk.f32.gmra.mxu1 %vm239_vm0, %v2329_v30 }
  0x56   : > { %388 = vmatprep.mubr.f32.mxu0 %v3147_v0  ;;  %549 = vmatprep.mubr.f32.mxu1 %v3147_v0 }
  0x59   : > { %1895 = vmatmul.mubr.msk.f32.gmra.mxu0 %vm239_vm0, %v2340_v31  ;;  %1911 = vmatmul.mubr.msk.f32.gmra.mxu1 %vm239_vm0, %v2340_v31 }
  0x5a   : > { %394 = vmatprep.mubr.f32.mxu0 %v3147_v0  ;;  %555 = vmatprep.mubr.f32.mxu1 %v3147_v0 }
  0x5d   : > { %1896 = vmatmul.mubr.msk.f32.gmra.mxu0 %vm239_vm0, %v2351_v32  ;;  %1912 = vmatmul.mubr.msk.f32.gmra.mxu1 %vm239_vm0, %v2351_v32 }
  0x5e   : > { %400 = vmatprep.mubr.f32.mxu0 %v3147_v0  ;;  %561 = vmatprep.mubr.f32.mxu1 %v3147_v0 }
  0x61   : > { %1897 = vmatmul.mubr.msk.f32.gmra.mxu0 %vm239_vm0, %v2362_v33  ;;  %1913 = vmatmul.mubr.msk.f32.gmra.mxu1 %vm239_vm0, %v2362_v33 }
  0x62   : > { %406 = vmatprep.mubr.f32.mxu0 %v3147_v0  ;;  %567 = vmatprep.mubr.f32.mxu1 %v3147_v0 }
  0x65   : > { %1898 = vmatmul.mubr.msk.f32.gmra.mxu0 %vm239_vm0, %v2373_v34  ;;  %1914 = vmatmul.mubr.msk.f32.gmra.mxu1 %vm239_vm0, %v2373_v34 }
  0x66   : > { %412 = vmatprep.mubr.f32.mxu0 %v3147_v0  ;;  %573 = vmatprep.mubr.f32.mxu1 %v3147_v0 }
  0x69   : > { %1899 = vmatmul.mubr.msk.f32.gmra.mxu0 %vm239_vm0, %v2384_v35  ;;  %1915 = vmatmul.mubr.msk.f32.gmra.mxu1 %vm239_vm0, %v2384_v35 }
  0x6a   : > { %418 = vmatprep.mubr.f32.mxu0 %v3147_v0  ;;  %579 = vmatprep.mubr.f32.mxu1 %v3147_v0 }
  0x6d   : > { %1900 = vmatmul.mubr.msk.f32.gmra.mxu0 %vm239_vm0, %v2395_v36  ;;  %1916 = vmatmul.mubr.msk.f32.gmra.mxu1 %vm239_vm0, %v2395_v36 }
  0x6e   : > { %424 = vmatprep.mubr.f32.mxu0 %v3147_v0  ;;  %585 = vmatprep.mubr.f32.mxu1 %v3147_v0 }
  0x71   : > { %1901 = vmatmul.mubr.msk.f32.gmra.mxu0 %vm239_vm0, %v2406_v37  ;;  %1917 = vmatmul.mubr.msk.f32.gmra.mxu1 %vm239_vm0, %v2406_v37 }
  0x72   : > { %430 = vmatprep.mubr.f32.mxu0 %v3147_v0  ;;  %591 = vmatprep.mubr.f32.mxu1 %v3147_v0 }
  0x75   : > { %1902 = vmatmul.mubr.msk.f32.gmra.mxu0 %vm239_vm0, %v2417_v38  ;;  %1918 = vmatmul.mubr.msk.f32.gmra.mxu1 %vm239_vm0, %v2417_v38 }
  0x76   : > { %436 = vmatprep.mubr.f32.mxu0 %v3147_v0  ;;  %597 = vmatprep.mubr.f32.mxu1 %v3147_v0 }
  0x79   : > { %1903 = vmatmul.mubr.msk.f32.gmra.mxu0 %vm239_vm0, %v2428_v39  ;;  %1919 = vmatmul.mubr.msk.f32.gmra.mxu1 %vm239_vm0, %v2428_v39 }
  0x7a   : > { %442 = vmatprep.mubr.f32.mxu0 %v3147_v0  ;;  %603 = vmatprep.mubr.f32.mxu1 %v3147_v0 }
  0x7d   : > { %1904 = vmatmul.mubr.msk.f32.gmra.mxu0 %vm239_vm0, %v2439_v40  ;;  %1920 = vmatmul.mubr.msk.f32.gmra.mxu1 %vm239_vm0, %v2439_v40 }
  0x7e   : > { %674 = vmatprep.mubr.f32.mxu0 %v3147_v0  ;;  %835 = vmatprep.mubr.f32.mxu1 %v3147_v0 }
  0x81   : > { %1921 = vmatmul.mubr.msk.f32.vlgmr.msra.gmra.mxu0 %vm239_vm0, %v2262_v13  ;;  %1937 = vmatmul.mubr.msk.f32.vlgmr.msra.gmra.mxu1 %vm239_vm0, %v2262_v13  ;;  %v2609_v13 = vsub.s32 1, %v2591_v3 }
  0x82   : > { %680 = vmatprep.mubr.f32.mxu0 %v3147_v0  ;;  %841 = vmatprep.mubr.f32.mxu1 %v3147_v0 }
  0x83   : > { %3204 = vst [vmem:[#allocation10_spill] sm:$0xff] %v2609_v13  ;;  %v999_v24 = vrot.slane %v215_v8, %v2609_v13  ;;  %v1007_v25 = vrot.slane %v217_v10, %v2609_v13  ;;  %v1003_v26 = vrot.slane %v216_v11, %v2609_v13 }
  0x85   : > { %1922 = vmatmul.mubr.msk.f32.gmra.mxu0 %vm239_vm0, %v2275_v18  ;;  %1938 = vmatmul.mubr.msk.f32.gmra.mxu1 %vm239_vm0, %v2275_v18 }
  0x86   : > { %686 = vmatprep.mubr.f32.mxu0 %v3147_v0  ;;  %847 = vmatprep.mubr.f32.mxu1 %v3147_v0 }
  0x89   : > { %1923 = vmatmul.mubr.msk.f32.gmra.mxu0 %vm239_vm0, %v2292_v23  ;;  %1939 = vmatmul.mubr.msk.f32.gmra.mxu1 %vm239_vm0, %v2292_v23  ;;  %v947_v23 = vrot.slane %v218_v12, %v2603_v9 }
  0x8a   : > { %692 = vmatprep.mubr.f32.mxu0 %v3147_v0  ;;  %853 = vmatprep.mubr.f32.mxu1 %v3147_v0 }
  0x8d   : > { %1924 = vmatmul.mubr.msk.f32.gmra.mxu0 %vm239_vm0, %v2307_v28  ;;  %1940 = vmatmul.mubr.msk.f32.gmra.mxu1 %vm239_vm0, %v2307_v28  ;;  %v2635_v28 = vsub.s32 4, %v2591_v3 }
  0x8e   : > { %698 = vmatprep.mubr.f32.mxu0 %v3147_v0  ;;  %859 = vmatprep.mubr.f32.mxu1 %v3147_v0 }
  0x8f   : > { %3208 = vst [vmem:[#allocation14_spill] sm:$0xff] %v2635_v28  ;;  %v2673_v9 = vrot.slane %v217_v10, %v2635_v28 }
  0x91   : > { %1925 = vmatmul.mubr.msk.f32.gmra.mxu0 %vm239_vm0, %v2318_v29  ;;  %1941 = vmatmul.mubr.msk.f32.gmra.mxu1 %vm239_vm0, %v2318_v29  ;;  %3216 = vst [vmem:[#allocation22_spill] sm:$0xff] %v2673_v9 }
  0x92   : > { %704 = vmatprep.mubr.f32.mxu0 %v3147_v0  ;;  %865 = vmatprep.mubr.f32.mxu1 %v3147_v0 }
  0x95   : > { %1926 = vmatmul.mubr.msk.f32.gmra.mxu0 %vm239_vm0, %v2329_v30  ;;  %1942 = vmatmul.mubr.msk.f32.gmra.mxu1 %vm239_vm0, %v2329_v30  ;;  %v1011_v30 = vrot.slane %v218_v12, %v2609_v13  ;;  %v2670_v13 = vrot.slane %v215_v8, %v2635_v28 }
  0x96   : > { %710 = vmatprep.mubr.f32.mxu0 %v3147_v0  ;;  %871 = vmatprep.mubr.f32.mxu1 %v3147_v0 }
  0x97   : > { %3215 = vst [vmem:[#allocation21_spill] sm:$0xff] %v2670_v13 }
  0x99   : > { %1927 = vmatmul.mubr.msk.f32.gmra.mxu0 %vm239_vm0, %v2340_v31  ;;  %1943 = vmatmul.mubr.msk.f32.gmra.mxu1 %vm239_vm0, %v2340_v31  ;;  %v1063_v31 = vrot.slane %v215_v8, %v2616_v16 }
  0x9a   : > { %716 = vmatprep.mubr.f32.mxu0 %v3147_v0  ;;  %877 = vmatprep.mubr.f32.mxu1 %v3147_v0 }
  0x9d   : > { %1928 = vmatmul.mubr.msk.f32.gmra.mxu0 %vm239_vm0, %v2351_v32  ;;  %1944 = vmatmul.mubr.msk.f32.gmra.mxu1 %vm239_vm0, %v2351_v32  ;;  %v1071_v32 = vrot.slane %v217_v10, %v2616_v16 }
  0x9e   : > { %722 = vmatprep.mubr.f32.mxu0 %v3147_v0  ;;  %883 = vmatprep.mubr.f32.mxu1 %v3147_v0 }
  0xa1   : > { %1929 = vmatmul.mubr.msk.f32.gmra.mxu0 %vm239_vm0, %v2362_v33  ;;  %1945 = vmatmul.mubr.msk.f32.gmra.mxu1 %vm239_vm0, %v2362_v33  ;;  %v2643_v33 = vsub.s32 5, %v2591_v3 }
  0xa2   : > { %728 = vmatprep.mubr.f32.mxu0 %v3147_v0  ;;  %889 = vmatprep.mubr.f32.mxu1 %v3147_v0 }
  0xa3   : > { %3210 = vst [vmem:[#allocation16_spill] sm:$0xff] %v2643_v33  ;;  %v2692_v13 = vrot.slane %v216_v11, %v2643_v33  ;;  %v2695_v9 = vrot.slane %v218_v12, %v2643_v33 }
  0xa5   : > { %1930 = vmatmul.mubr.msk.f32.gmra.mxu0 %vm239_vm0, %v2373_v34  ;;  %1946 = vmatmul.mubr.msk.f32.gmra.mxu1 %vm239_vm0, %v2373_v34  ;;  %v1067_v34 = vrot.slane %v216_v11, %v2616_v16  ;;  %3222 = vst [vmem:[#allocation28_spill] sm:$0xff] %v2692_v13  ;;  %3223 = vst [vmem:[#allocation29_spill] sm:$0xff] %v2695_v9 }
  0xa6   : > { %734 = vmatprep.mubr.f32.mxu0 %v3147_v0  ;;  %895 = vmatprep.mubr.f32.mxu1 %v3147_v0 }
  0xa9   : > { %1931 = vmatmul.mubr.msk.f32.gmra.mxu0 %vm239_vm0, %v2384_v35  ;;  %1947 = vmatmul.mubr.msk.f32.gmra.mxu1 %vm239_vm0, %v2384_v35  ;;  %v1075_v35 = vrot.slane %v218_v12, %v2616_v16  ;;  %v2667_v16 = vsub.s32 7, %v2591_v3 }
  0xaa   : > { %740 = vmatprep.mubr.f32.mxu0 %v3147_v0  ;;  %901 = vmatprep.mubr.f32.mxu1 %v3147_v0 }
  0xab   : > { %3214 = vst [vmem:[#allocation20_spill] sm:$0xff] %v2667_v16  ;;  %v2714_v13 = vrot.slane %v215_v8, %v2667_v16  ;;  %v2720_v9 = vrot.slane %v216_v11, %v2667_v16 }
  0xad   : > { %1932 = vmatmul.mubr.msk.f32.gmra.mxu0 %vm239_vm0, %v2395_v36  ;;  %1948 = vmatmul.mubr.msk.f32.gmra.mxu1 %vm239_vm0, %v2395_v36  ;;  %v2648_v36 = vrot.slane %v215_v8, %v2619_v17  ;;  %3229 = vst [vmem:[#allocation35_spill] sm:$0xff] %v2714_v13 }
  0xae   : > { %746 = vmatprep.mubr.f32.mxu0 %v3147_v0  ;;  %907 = vmatprep.mubr.f32.mxu1 %v3147_v0 }
  0xb1   : > { %1933 = vmatmul.mubr.msk.f32.gmra.mxu0 %vm239_vm0, %v2406_v37  ;;  %1949 = vmatmul.mubr.msk.f32.gmra.mxu1 %vm239_vm0, %v2406_v37 }
  0xb2   : > { %752 = vmatprep.mubr.f32.mxu0 %v3147_v0  ;;  %913 = vmatprep.mubr.f32.mxu1 %v3147_v0 }
  0xb5   : > { %1934 = vmatmul.mubr.msk.f32.gmra.mxu0 %vm239_vm0, %v2417_v38  ;;  %1950 = vmatmul.mubr.msk.f32.gmra.mxu1 %vm239_vm0, %v2417_v38 }
  0xb6   : > { %758 = vmatprep.mubr.f32.mxu0 %v3147_v0  ;;  %919 = vmatprep.mubr.f32.mxu1 %v3147_v0 }
  0xb9   : > { %1935 = vmatmul.mubr.msk.f32.gmra.mxu0 %vm239_vm0, %v2428_v39  ;;  %1951 = vmatmul.mubr.msk.f32.gmra.mxu1 %vm239_vm0, %v2428_v39  ;;  %v2655_v39 = vsub.s32 6, %v2591_v3  ;;  %v2689_v3 = vrot.slane %v217_v10, %v2643_v33 }
  0xba   : > { %764 = vmatprep.mubr.f32.mxu0 %v3147_v0  ;;  %925 = vmatprep.mubr.f32.mxu1 %v3147_v0 }
  0xbb   : > { %3213 = vst [vmem:[#allocation19_spill] sm:$0xff] %v2655_v39  ;;  %3221 = vst [vmem:[#allocation27_spill] sm:$0xff] %v2689_v3  ;;  %v2711_v3 = vrot.slane %v218_v12, %v2655_v39 }
  0xbd   : > { %1936 = vmatmul.mubr.msk.f32.gmra.mxu0 %vm239_vm0, %v2439_v40  ;;  %1952 = vmatmul.mubr.msk.f32.gmra.mxu1 %vm239_vm0, %v2439_v40  ;;  %v2658_v40 = vrot.slane %v217_v10, %v2619_v17  ;;  %3228 = vst [vmem:[#allocation34_spill] sm:$0xff] %v2711_v3 }
  0xbe   : > { %1529 = vmatprep.mubr.f32.mxu0 %v3147_v0  ;;  %1600 = vmatprep.mubr.f32.mxu1 %v3147_v0  ;;  %v2664_v0 = vrot.slane %v218_v12, %v2619_v17  ;;  %v2686_v17 = vrot.slane %v215_v8, %v2643_v33  ;;  %v2717_v33 = vrot.slane %v217_v10, %v2667_v16 }
  0xc0   : > { %3220 = vst [vmem:[#allocation26_spill] sm:$0xff] %v2686_v17  ;;  %v2708_v17 = vrot.slane %v216_v11, %v2655_v39  ;;  %3230 = vst [vmem:[#allocation36_spill] sm:$0xff] %v2717_v33 }
  0xc2   : > { %3227 = vst [vmem:[#allocation33_spill] sm:$0xff] %v2708_v17 }
 0x101   : > { %v2543_v41 = vpop.f32.mrf.mxu0  ;;  %v2545_v42 = vpop.f32.mrf.mxu1 }
 0x103   : > { %v2547_v43 = vpop.f32.mrf.mxu0  ;;  %v2549_v44 = vpop.f32.mrf.mxu1 }
 0x105   : > { %v2551_v45 = vpop.f32.mrf.mxu0  ;;  %v2553_v46 = vpop.f32.mrf.mxu1 }
 0x106   : > { %v972_v33 = vmul.f32 %v935_v20, %v2551_v45 }
 0x107   : > { %v2555_v47 = vpop.f32.mrf.mxu0  ;;  %v2557_v48 = vpop.f32.mrf.mxu1 }
 0x109   : > { %v2559_v49 = vpop.f32.mrf.mxu0  ;;  %v2561_v50 = vpop.f32.mrf.mxu1 }
 0x10a   : > { %v1028_v17 = vmul.f32 %v999_v24, %v2559_v49 }
 0x10b   : > { %v2563_v51 = vpop.f32.mrf.mxu0  ;;  %v2565_v52 = vpop.f32.mrf.mxu1 }
 0x10c   : > { %v1029_v49 = vmul.f32 %v1003_v26, %v2563_v51 }
 0x10d   : > { %v2567_v53 = vpop.f32.mrf.mxu0  ;;  %v2569_v54 = vpop.f32.mrf.mxu1 }
 0x10f   : > { %v2571_v55 = vpop.f32.mrf.mxu0  ;;  %v2573_v56 = vpop.f32.mrf.mxu1 }
 0x110   : > { %v1037_v45 = vmul.f32 %v1003_v26, %v2571_v55 }
 0x111   : > { %v2575_v57 = vpop.f32.mrf.mxu0  ;;  %v2577_v58 = vpop.f32.mrf.mxu1 }
 0x112   : > { %v1094_v51 = vmul.f32 %v1071_v32, %v2577_v58 }
 0x113   : > { %v2579_v59 = vpop.f32.mrf.mxu0  ;;  %v2581_v60 = vpop.f32.mrf.mxu1 }
 0x115   : > { %v2583_v62 = vpop.f32.mrf.mxu0  ;;  %v2585_v63 = vpop.f32.mrf.mxu1 }
 0x116   : > { %v1102_v55 = vmul.f32 %v1071_v32, %v2585_v63 }
 0x117   : > { %v2587_v1 = vpop.f32.mrf.mxu0  ;;  %v2589_v2 = vpop.f32.mrf.mxu1 }
 0x119   : > { %v2593_v4 = vpop.f32.mrf.mxu0  ;;  %v2595_v5 = vpop.f32.mrf.mxu1 }
 0x11b   : > { %v2597_v6 = vpop.f32.mrf.mxu0  ;;  %v2599_v7 = vpop.f32.mrf.mxu1 }
 0x11d   : > { %v2611_v14 = vpop.f32.mrf.mxu0  ;;  %v2613_v15 = vpop.f32.mrf.mxu1 }
 0x11f   : > { %v2621_v18 = vpop.f32.mrf.mxu0  ;;  %v2623_v19 = vpop.f32.mrf.mxu1 }
 0x121   : > { %v2632_v27 = vpop.f32.mrf.mxu0  ;;  %v2637_v29 = vpop.f32.mrf.mxu1 }
 0x122   : > { %3207 = vst [vmem:[#allocation13_spill] sm:$0xff] %v2632_v27  ;;  %3209 = vst [vmem:[#allocation15_spill] sm:$0xff] %v2637_v29 }
 0x123   : > { %v2650_v37 = vpop.f32.mrf.mxu0  ;;  %v2652_v38 = vpop.f32.mrf.mxu1 }
 0x124   : > { %3211 = vst [vmem:[#allocation17_spill] sm:$0xff] %v2650_v37  ;;  %3212 = vst [vmem:[#allocation18_spill] sm:$0xff] %v2652_v38  ;;  %v2676_v38 = vrot.slane %v216_v11, %v2635_v28  ;;  %v2679_v37 = vrot.slane %v218_v12, %v2635_v28  ;;  %v967_v11 = vmul.f32 %v947_v23, %v2549_v44 }
 0x125   : > { %v2681_v29 = vpop.f32.mrf.mxu0  ;;  %v2683_v27 = vpop.f32.mrf.mxu1  ;;  %v1038_v44 = vmul.f32 %v1007_v25, %v2569_v54  ;;  %v1100_v54 = vmul.f32 %v1063_v31, %v2583_v62  ;;  %v1158_v62 = vmul.f32 %v2658_v40, %v2595_v5  ;;  %v1164_v5 = vmul.f32 %v2648_v36, %v2611_v14 }
 0x126   : > { %3217 = vst [vmem:[#allocation23_spill] sm:$0xff] %v2676_v38  ;;  %3218 = vst [vmem:[#allocation24_spill] sm:$0xff] %v2681_v29  ;;  %v2702_v29 = vrot.slane %v215_v8, %v2655_v39 }
 0x127   : > { %3219 = vst [vmem:[#allocation25_spill] sm:$0xff] %v2683_v27  ;;  %v2697_v38 = vpop.f32.mrf.mxu0  ;;  %v2699_v28 = vpop.f32.mrf.mxu1  ;;  %v2705_v27 = vrot.slane %v217_v10, %v2655_v39  ;;  %v1030_v39 = vmul.f32 %v1007_v25, %v2561_v50  ;;  %v965_v10 = vmul.f32 %v939_v22, %v2547_v43  ;;  %v1031_v50 = vmul.f32 %v1011_v30, %v2565_v52 }
 0x128   : > { %3224 = vst [vmem:[#allocation30_spill] sm:$0xff] %v2699_v28  ;;  %3225 = vst [vmem:[#allocation31_spill] sm:$0xff] %v2702_v29  ;;  %v2723_v29 = vrot.slane %v218_v12, %v2667_v16  ;;  %v966_v28 = vmul.f32 %v943_v21, %v2545_v42  ;;  %v974_v12 = vmul.f32 %v943_v21, %v2553_v46 }
 0x129   : > { %3226 = vst [vmem:[#allocation32_spill] sm:$0xff] %v2705_v27  ;;  %v964_v27 = vmul.f32 %v935_v20, %v2543_v41  ;;  %v2729_v3 = vpop.f32.mrf.mxu0  ;;  %v2731_v8 = vpop.f32.mrf.mxu1  ;;  %v973_v41 = vmul.f32 %v939_v22, %v2555_v47  ;;  %v975_v42 = vmul.f32 %v947_v23, %v2557_v48  ;;  %v1036_v43 = vmul.f32 %v999_v24, %v2567_v53 }
 0x12a   : > { %v1039_v46 = vmul.f32 %v1011_v30, %v2573_v56  ;;  %v1046_v47 = vadd.f32 %v1030_v39, %v966_v28  ;;  %v1092_v48 = vmul.f32 %v1063_v31, %v2575_v57  ;;  %v1093_v22 = vmul.f32 %v1067_v34, %v2579_v59 }
 0x12b   : > { %v2741_v16 = vpop.f32.mrf.mxu0  ;;  %v2743_v13 = vpop.f32.mrf.mxu1  ;;  %v1044_v20 = vadd.f32 %v1028_v17, %v964_v27  ;;  %v1095_v53 = vmul.f32 %v1075_v35, %v2581_v60  ;;  %v1045_v23 = vadd.f32 %v1029_v49, %v965_v10  ;;  %v1047_v56 = vadd.f32 %v1031_v50, %v967_v11  ;;  %v3235_v14 = vld [vmem:[#allocation17_spill] sm:$0xff] }
 0x12c   : > { %v1101_v17 = vmul.f32 %v1067_v34, %v2587_v1  ;;  %v1103_v57 = vmul.f32 %v1075_v35, %v2589_v2  ;;  %v1052_v25 = vadd.f32 %v1036_v43, %v972_v33  ;;  %v1054_v26 = vadd.f32 %v1038_v44, %v974_v12  ;;  %v3232_v43 = vld [vmem:[#allocation21_spill] sm:$0xff] }
 0x12d   : > { %v2751_v21 = vpop.f32.mrf.mxu0  ;;  %v2753_v52 = vpop.f32.mrf.mxu1  ;;  %v1053_v27 = vadd.f32 %v1037_v45, %v973_v41  ;;  %v1055_v28 = vadd.f32 %v1039_v46, %v975_v42  ;;  %v1108_v30 = vadd.f32 %v1092_v48, %v1044_v20  ;;  %v1110_v59 = vadd.f32 %v1094_v51, %v1046_v47  ;;  %v3234_v45 = vld [vmem:[#allocation22_spill] sm:$0xff] }
 0x12e   : > { %v1156_v60 = vmul.f32 %v2648_v36, %v2593_v4  ;;  %v1109_v1 = vadd.f32 %v1093_v22, %v1045_v23  ;;  %v1111_v2 = vadd.f32 %v1095_v53, %v1047_v56  ;;  %v1116_v32 = vadd.f32 %v1100_v54, %v1052_v25  ;;  %v3236_v36 = vld [vmem:[#allocation23_spill] sm:$0xff] }
 0x12f   : > { %v422_v24 = vpop.f32.mrf.mxu0  ;;  %v583_v58 = vpop.f32.mrf.mxu1  ;;  %v1118_v34 = vadd.f32 %v1102_v55, %v1054_v26  ;;  %v1117_v33 = vadd.f32 %v1101_v17, %v1053_v27  ;;  %v1119_v35 = vadd.f32 %v1103_v57, %v1055_v28  ;;  %v1157_v39 = vmul.f32 %v2661_v61, %v2597_v6  ;;  %v3231_v6 = vld [vmem:[#allocation13_spill] sm:$0xff]  ;;  %v3240_v54 = vld [vmem:[#allocation30_spill] sm:$0xff] }
 0x130   : > { %v1159_v10 = vmul.f32 %v2664_v0, %v2599_v7  ;;  %v1166_v12 = vmul.f32 %v2658_v40, %v2613_v15  ;;  %v1165_v41 = vmul.f32 %v2661_v61, %v2621_v18  ;;  %v1167_v42 = vmul.f32 %v2664_v0, %v2623_v19  ;;  %v3233_v7 = vld [vmem:[#allocation15_spill] sm:$0xff]  ;;  %v3237_v15 = vld [vmem:[#allocation18_spill] sm:$0xff]  ;;  %v3238_v18 = vld [vmem:[#allocation24_spill] sm:$0xff] }
 0x131   : > { %v2765_v63 = vpop.f32.mrf.mxu0  ;;  %v2767_v31 = vpop.f32.mrf.mxu1  ;;  %v1172_v49 = vadd.f32 %v1156_v60, %v1108_v30  ;;  %v1174_v50 = vadd.f32 %v1158_v62, %v1110_v59  ;;  %v1220_v44 = vmul.f32 %v3232_v43, %v3231_v6  ;;  %v1222_v46 = vmul.f32 %v3234_v45, %v3233_v7  ;;  %v3239_v0 = vld [vmem:[#allocation25_spill] sm:$0xff]  ;;  %v3241_v30 = vld [vmem:[#allocation28_spill] sm:$0xff]  ;;  %v3243_v7 = vld [vmem:[#allocation26_spill] sm:$0xff] }
 0x132   : > { %v1221_v48 = vmul.f32 %v3236_v36, %v3235_v14  ;;  %v1223_v40 = vmul.f32 %v2679_v37, %v3237_v15  ;;  %v1228_v61 = vmul.f32 %v3232_v43, %v3238_v18  ;;  %v1230_v19 = vmul.f32 %v3234_v45, %v3239_v0  ;;  %v3242_v60 = vld [vmem:[#allocation29_spill] sm:$0xff]  ;;  %v3247_v14 = vld [vmem:[#allocation31_spill] sm:$0xff]  ;;  %v3250_v18 = vld [vmem:[#allocation36_spill] sm:$0xff] }
 0x133   : > { %v428_v4 = vpop.f32.mrf.mxu0  ;;  %v589_v11 = vpop.f32.mrf.mxu1  ;;  %v1173_v51 = vadd.f32 %v1157_v39, %v1109_v1  ;;  %v1175_v22 = vadd.f32 %v1159_v10, %v1111_v2  ;;  %v1229_v53 = vmul.f32 %v3236_v36, %v2697_v38  ;;  %v1231_v55 = vmul.f32 %v2679_v37, %v3240_v54 }
 0x134   : > { %v1180_v17 = vadd.f32 %v1164_v5, %v1116_v32  ;;  %v1182_v57 = vadd.f32 %v1166_v12, %v1118_v34  ;;  %v1181_v25 = vadd.f32 %v1165_v41, %v1117_v33  ;;  %v1183_v26 = vadd.f32 %v1167_v42, %v1119_v35  ;;  %v3244_v34 = vld [vmem:[#allocation27_spill] sm:$0xff] }
 0x135   : > { %v432_v20 = vpop.f32.mrf.mxu0  ;;  %v593_v47 = vpop.f32.mrf.mxu1  ;;  %v1236_v27 = vadd.f32 %v1220_v44, %v1172_v49  ;;  %v1238_v28 = vadd.f32 %v1222_v46, %v1174_v50  ;;  %v1293_v59 = vmul.f32 %v3241_v30, %v422_v24  ;;  %v1295_v62 = vmul.f32 %v3242_v60, %v583_v58  ;;  %v3246_v44 = vld [vmem:[#allocation34_spill] sm:$0xff] }
 0x136   : > { %v1237_v39 = vadd.f32 %v1221_v48, %v1173_v51  ;;  %v1239_v10 = vadd.f32 %v1223_v40, %v1175_v22  ;;  %v1244_v38 = vadd.f32 %v1228_v61, %v1180_v17  ;;  %v1246_v6 = vadd.f32 %v1230_v19, %v1182_v57 }
 0x137   : > { %v434_v23 = vpop.f32.mrf.mxu0  ;;  %v595_v56 = vpop.f32.mrf.mxu1  ;;  %v1245_v43 = vadd.f32 %v1229_v53, %v1181_v25  ;;  %v1247_v37 = vadd.f32 %v1231_v55, %v1183_v26  ;;  %v1284_v32 = vmul.f32 %v3243_v7, %v2729_v3  ;;  %v1286_v33 = vmul.f32 %v3244_v34, %v2731_v8  ;;  %v3245_v3 = vld [vmem:[#allocation33_spill] sm:$0xff] }
 0x138   : > { %v1285_v24 = vmul.f32 %v3241_v30, %v2741_v16  ;;  %v1287_v58 = vmul.f32 %v3242_v60, %v2743_v13  ;;  %v1292_v12 = vmul.f32 %v3243_v7, %v2751_v21  ;;  %v1294_v41 = vmul.f32 %v3244_v34, %v2753_v52  ;;  %v3248_v16 = vld [vmem:[#allocation32_spill] sm:$0xff]  ;;  %v3249_v21 = vld [vmem:[#allocation35_spill] sm:$0xff] }
 0x139   : > { %v438_v1 = vpop.f32.mrf.mxu0  ;;  %v599_v2 = vpop.f32.mrf.mxu1  ;;  %v1309_v42 = vadd.f32 %v1293_v59, %v1245_v43  ;;  %v1311_v49 = vadd.f32 %v1295_v62, %v1247_v37  ;;  %v1349_v50 = vmul.f32 %v3245_v3, %v428_v4  ;;  %v1351_v8 = vmul.f32 %v3246_v44, %v589_v11 }
 0x13a   : > { %v1356_v36 = vmul.f32 %v3247_v14, %v432_v20  ;;  %v1358_v48 = vmul.f32 %v3248_v16, %v593_v47  ;;  %v1412_v40 = vmul.f32 %v3249_v21, %v438_v1  ;;  %v1414_v52 = vmul.f32 %v3250_v18, %v599_v2 }
 0x13b   : > { %v440_v35 = vpop.f32.mrf.mxu0  ;;  %v601_v5 = vpop.f32.mrf.mxu1  ;;  %v1357_v19 = vmul.f32 %v3245_v3, %v434_v23  ;;  %v1359_v20 = vmul.f32 %v3246_v44, %v595_v56  ;;  %v1348_v22 = vmul.f32 %v3247_v14, %v2765_v63  ;;  %v1350_v53 = vmul.f32 %v3248_v16, %v2767_v31 }
 0x13c   : > { %v1413_v13 = vmul.f32 %v2720_v9, %v440_v35  ;;  %v1415_v15 = vmul.f32 %v2723_v29, %v601_v5  ;;  %v1308_v30 = vadd.f32 %v1292_v12, %v1244_v38  ;;  %v1301_v62 = vadd.f32 %v1285_v24, %v1237_v39 }
 0x13d   : > { %v444_v45 = vpop.f32.mrf.mxu0  ;;  %v605_v46 = vpop.f32.mrf.mxu1  ;;  %v1428_v59 = vadd.f32 %v1412_v40, %v1348_v22  ;;  %v1303_v31 = vadd.f32 %v1287_v58, %v1239_v10  ;;  %v1300_v43 = vadd.f32 %v1284_v32, %v1236_v27  ;;  %v1302_v37 = vadd.f32 %v1286_v33, %v1238_v28  ;;  %v2848_v27 = vld [vmem:[%s3143_s2] sm:$0x3] }
 0x13e   : > { %v1420_v61 = vmul.f32 %v3249_v21, %v444_v45  ;;  %v1422_v4 = vmul.f32 %v3250_v18, %v605_v46  ;;  %v1429_v25 = vadd.f32 %v1413_v13, %v1349_v50  ;;  %v1431_v23 = vadd.f32 %v1415_v15, %v1351_v8  ;;  %3251 = vst [vmem:[#allocation13_spill] sm:$0xff] %v2848_v27  ;;  %v219_v18 = vld [vmem:[%s2239_s17 + $0xe0] sm:$0xff] }
 0x13f   : > { %v446_v0 = vpop.f32.mrf.mxu0  ;;  %v607_v11 = vpop.f32.mrf.mxu1  ;;  %v1445_v12 = vmul.f32 %v1428_v59, %v1300_v43  ;;  %v3252_v24 = vmov 0.0   ;;  %v3256_v59 = vld [vmem:[#allocation11_spill] sm:$0xff] }
 0x140   : > { %v1421_v47 = vmul.f32 %v2720_v9, %v446_v0  ;;  %v1423_v51 = vmul.f32 %v2723_v29, %v607_v11  ;;  %v1436_v54 = vadd.f32 %v1420_v61, %v1356_v36  ;;  %v1438_v55 = vadd.f32 %v1422_v4, %v1358_v48  ;;  %v221_v4 = vld [vmem:[%s2239_s17 + $0xf0] sm:$0xff]  ;;  %v220_v0 = vld [vmem:[%s2239_s17 + $0xe8] sm:$0xff]  ;;  %v222_v11 = vld [vmem:[%s2239_s17 + $0xf8] sm:$0xff]  ;;  %s1888_s17 = sshll.u32 %s2235_s9, 4 }
 0x141   : > { %v2829_v17 = vpop.f32.mrf.mxu0  ;;  %v2831_v57 = vpop.f32.mrf.mxu1  ;;  %v1310_v9 = vadd.f32 %v1294_v41, %v1246_v6  ;;  %v1430_v29 = vadd.f32 %v1414_v52, %v1350_v53  ;;  %v1446_v38 = vmul.f32 %v1429_v25, %v1301_v62  ;;  %v1448_v6 = vmul.f32 %v1431_v23, %v1303_v31  ;;  %v3255_v23 = vld [vmem:[#allocation10_spill] sm:$0xff]  ;;  %s188_s6 = scalar_lea.vmem [#allocation5], %s1888_s17 }
 0x142   : > { %v1437_v26 = vadd.f32 %v1421_v47, %v1357_v19  ;;  %v1439_v56 = vadd.f32 %v1423_v51, %v1359_v20  ;;  %v1453_v7 = vmul.f32 %v1436_v54, %v1308_v30  ;;  %v3253_v47 = vld [vmem:[#allocation9_spill] sm:$0xff]  ;;  %v1019_v30 = vrot.slane %v220_v0, %v3255_v23  ;;  %s1810_s8 = sshll.u32 %s188_s6, 4  ;;  %s1811_s8 = int_to_ptr.vmem [resolvable:$true] %s1810_s8 }
 0x143   : > { %v2833_v60 = vpop.f32.mrf.mxu0  ;;  %v2835_v63 = vpop.f32.mrf.mxu1  ;;  %v1455_v34 = vmul.f32 %v1438_v55, %v1310_v9  ;;  %v1447_v41 = vmul.f32 %v1430_v29, %v1302_v37  ;;  %v951_v51 = vrot.slane %v219_v18, %v3253_v47  ;;  %v959_v22 = vrot.slane %v221_v4, %v3253_v47  ;;  %v3259_v37 = vld [vmem:[#allocation12_spill] sm:$0xff]  ;;  %s2043_s27 = scalar_lea.vmem %s1811_s8, 256  ;;  %p2050_p5 = scmp.lt.s32.totalorder %s1811_s8, %s2048_s29 }
 0x144   : > { %v1454_v1 = vmul.f32 %v1437_v26, %v1309_v42  ;;  %v1456_v2 = vmul.f32 %v1439_v56, %v1311_v49  ;;  %v955_v53 = vrot.slane %v220_v0, %v3253_v47  ;;  %v963_v54 = vrot.slane %v222_v11, %v3253_v47  ;;  %p2044_p11 = scmp.ne.s32.totalorder %s1811_s8, %s2043_s27  ;;  %p2051_p7 = scmp.lt.s32.totalorder %s2049_s16, %s2043_s27 }
 0x145   : > { %v2837_v35 = vpop.f32.mrf.mxu0  ;;  %v2839_v5 = vpop.f32.mrf.mxu1  ;;  %v1015_v26 = vrot.slane %v219_v18, %v3255_v23  ;;  %v1023_v56 = vrot.slane %v221_v4, %v3255_v23  ;;  %v1027_v9 = vrot.slane %v222_v11, %v3255_v23  ;;  %v1079_v29 = vrot.slane %v219_v18, %v3256_v59 }
 0x146   : > { %1493 = vmatprep.subr.mxu0 %v1454_v1  ;;  %1564 = vmatprep.subr.mxu1 %v1456_v2  ;;  %v1087_v62 = vrot.slane %v221_v4, %v3256_v59  ;;  %v1083_v31 = vrot.slane %v220_v0, %v3256_v59  ;;  %v1091_v1 = vrot.slane %v222_v11, %v3256_v59  ;;  %p2045_p13 = pnand %p2044_p11, %p3303_p12  ;;  %p2052_p8 = por %p2051_p7, %p2050_p5 }
 0x147   : > { %v2841_v3 = vpop.f32.mrf.mxu0  ;;  %v2843_v39 = vpop.f32.mrf.mxu1  ;;  %1494 = vmatpush1.msra.mxu0 %v1453_v7  ;;  %1565 = vmatpush1.msra.mxu1 %v1455_v34  ;;  %v2929_v7 = vrot.slane %v219_v18, %v3259_v37  ;;  %v2932_v34 = vrot.slane %v221_v4, %v3259_v37 }
 0x148   : > { %1495 = vmatprep.subr.mxu0 %v1446_v38  ;;  %1566 = vmatprep.subr.mxu1 %v1448_v6  ;;  %v2935_v38 = vrot.slane %v220_v0, %v3259_v37  ;;  %v2938_v6 = vrot.slane %v222_v11, %v3259_v37  ;;  %p2046_p4 = pneg %p2045_p13 }
 0x149   : > { %v2850_v28 = vpop.f32.mrf.mxu0  ;;  %v2852_v10 = vpop.f32.mrf.mxu1  ;;  %1496 = vmatpush1.msra.mxu0 %v1445_v12  ;;  %1567 = vmatpush1.msra.mxu1 %v1447_v41  ;;  %v3260_v12 = vld [vmem:[#allocation14_spill] sm:$0xff] }
 0x14a   : > { %1953 = vmatmul.mubr.msk.f32.vlgmr.msra.gmra.mxu0 %vm1461_vm1, %v2848_v27  ;;  %1954 = vmatmul.mubr.msk.f32.vlgmr.msra.gmra.mxu1 %vm1461_vm1, %v2848_v27  ;;  %v2941_v41 = vrot.slane %v219_v18, %v3260_v12  ;;  %v2947_v47 = vrot.slane %v220_v0, %v3260_v12  ;;  %v2950_v23 = vrot.slane %v222_v11, %v3260_v12  ;;  %p2053_p10 = pnand %p2052_p8, %p2046_p4 }
 0x14b   : > { %v2858_v32 = vpop.f32.mrf.mxu0  ;;  %v2860_v33 = vpop.f32.mrf.mxu1  ;;  %1671 = vmatprep.mubr.f32.mxu0 %v3252_v24  ;;  %1742 = vmatprep.mubr.f32.mxu1 %v3252_v24  ;;  %v2944_v24 = vrot.slane %v221_v4, %v3260_v12 }
 0x14c   : > { %3261 = vst [vmem:[#allocation17_spill] sm:$0xff] %v2941_v41  ;;  %3263 = vst [vmem:[#allocation18_spill] sm:$0xff] %v2947_v47 }
 0x14d   : > { %v2864_v58 = vpop.f32.mrf.mxu0  ;;  %v2866_v42 = vpop.f32.mrf.mxu1  ;;  %3262 = vst [vmem:[#allocation23_spill] sm:$0xff] %v2944_v24  ;;  %3264 = vst [vmem:[#allocation24_spill] sm:$0xff] %v2950_v23  ;;  %v3273_v23 = vld [vmem:[#allocation19_spill] sm:$0xff] }
 0x14f   : > { %v2868_v49 = vpop.f32.mrf.mxu0  ;;  %v2870_v50 = vpop.f32.mrf.mxu1 }
 0x151   : > { %v2872_v44 = vpop.f32.mrf.mxu0  ;;  %v2874_v8 = vpop.f32.mrf.mxu1 }
 0x153   : > { %v2876_v45 = vpop.f32.mrf.mxu0  ;;  %v2878_v46 = vpop.f32.mrf.mxu1 }
 0x155   : > { %v2880_v14 = vpop.f32.mrf.mxu0  ;;  %v2882_v36 = vpop.f32.mrf.mxu1 }
 0x157   : > { %v2884_v16 = vpop.f32.mrf.mxu0  ;;  %v2886_v48 = vpop.f32.mrf.mxu1 }
 0x159   : > { %v2888_v13 = vpop.f32.mrf.mxu0  ;;  %v2890_v15 = vpop.f32.mrf.mxu1 }
 0x15b   : > { %v2892_v21 = vpop.f32.mrf.mxu0  ;;  %v2894_v40 = vpop.f32.mrf.mxu1 }
 0x15d   : > { %v2897_v52 = vpop.f32.mrf.mxu0  ;;  %v2899_v61 = vpop.f32.mrf.mxu1 }
 0x15f   : > { %v2904_v19 = vpop.f32.mrf.mxu0  ;;  %v2906_v20 = vpop.f32.mrf.mxu1 }
 0x161   : > { %v2912_v55 = vpop.f32.mrf.mxu0  ;;  %v2914_v25 = vpop.f32.mrf.mxu1 }
 0x162   : > { %3254 = vst [vmem:[#allocation21_spill] sm:$0xff] %v2914_v25 }
 0x163   : > { %v2924_v2 = vpop.f32.mrf.mxu0  ;;  %v2926_v43 = vpop.f32.mrf.mxu1 }
 0x164   : > { %3257 = vst [vmem:[#allocation15_spill] sm:$0xff] %v2924_v2  ;;  %3258 = vst [vmem:[#allocation22_spill] sm:$0xff] %v2926_v43  ;;  %v3267_v43 = vld [vmem:[#allocation16_spill] sm:$0xff] }
 0x165   : > { %v2952_v59 = vpop.f32.mrf.mxu0  ;;  %v2954_v27 = vpop.f32.mrf.mxu1  ;;  %v2957_v2 = vrot.slane %v219_v18, %v3267_v43  ;;  %v2960_v37 = vrot.slane %v221_v4, %v3267_v43  ;;  %v2963_v25 = vrot.slane %v220_v0, %v3267_v43  ;;  %v2966_v24 = vrot.slane %v222_v11, %v3267_v43 }
 0x166   : > { %3265 = vst [vmem:[#allocation25_spill] sm:$0xff] %v2952_v59  ;;  %3266 = vst [vmem:[#allocation30_spill] sm:$0xff] %v2954_v27  ;;  %v2973_v59 = vrot.slane %v219_v18, %v3273_v23  ;;  %v2976_v27 = vrot.slane %v221_v4, %v3273_v23 }
 0x167   : > { %3268 = vst [vmem:[#allocation28_spill] sm:$0xff] %v2957_v2  ;;  %3269 = vst [vmem:[#allocation29_spill] sm:$0xff] %v2960_v37  ;;  %v2968_v47 = vpop.f32.mrf.mxu0  ;;  %v2970_v12 = vpop.f32.mrf.mxu1  ;;  %v2979_v2 = vrot.slane %v220_v0, %v3273_v23  ;;  %v2982_v37 = vrot.slane %v222_v11, %v3273_v23  ;;  %v1034_v23 = vmul.f32 %v1023_v56, %v2852_v10 }
 0x168   : > { %3270 = vst [vmem:[#allocation26_spill] sm:$0xff] %v2963_v25  ;;  %3271 = vst [vmem:[#allocation27_spill] sm:$0xff] %v2966_v24  ;;  %v3278_v25 = vld [vmem:[#allocation20_spill] sm:$0xff]  ;;  %v1035_v10 = vmul.f32 %v1027_v9, %v2860_v33 }
 0x169   : > { %3272 = vst [vmem:[#allocation33_spill] sm:$0xff] %v2970_v12  ;;  %3274 = vst [vmem:[#allocation34_spill] sm:$0xff] %v2973_v59  ;;  %v2985_v41 = vrot.slane %v219_v18, %v3278_v25  ;;  %v2988_v43 = vrot.slane %v221_v4, %v3278_v25  ;;  %v2991_v24 = vrot.slane %v220_v0, %v3278_v25  ;;  %v3002_v18 = vpop.f32.mrf.mxu1 }
 0x16a   : > { %3275 = vst [vmem:[#allocation31_spill] sm:$0xff] %v2976_v27  ;;  %3276 = vst [vmem:[#allocation32_spill] sm:$0xff] %v2979_v2  ;;  %v2994_v59 = vrot.slane %v222_v11, %v3278_v25  ;;  %v968_v27 = vmul.f32 %v951_v51, %v2829_v17  ;;  %v970_v12 = vmul.f32 %v959_v22, %v2831_v57 }
 0x16b   : > { %3277 = vst [vmem:[#allocation35_spill] sm:$0xff] %v2982_v37  ;;  %3279 = vst [vmem:[#allocation36_spill] sm:$0xff] %v2985_v41  ;;  %v1032_v2 = vmul.f32 %v1015_v26, %v2850_v28  ;;  %v3000_v37 = vpop.f32.mrf.mxu0  ;;  %v969_v4 = vmul.f32 %v955_v53, %v2833_v60  ;;  %v971_v0 = vmul.f32 %v963_v54, %v2835_v63  ;;  %v3014_v41 = vpop.f32.mrf.mxu1 }
 0x16c   : > { %3280 = vst [vmem:[#allocation9_spill] sm:$0xff] %v2988_v43  ;;  %v976_v43 = vmul.f32 %v951_v51, %v2837_v35  ;;  %v978_v11 = vmul.f32 %v959_v22, %v2839_v5  ;;  %v977_v17 = vmul.f32 %v955_v53, %v2841_v3  ;;  %v979_v57 = vmul.f32 %v963_v54, %v2843_v39 }
 0x16d   : > { %v1033_v28 = vmul.f32 %v1019_v30, %v2858_v32  ;;  %v3012_v25 = vpop.f32.mrf.mxu0  ;;  %v1040_v60 = vmul.f32 %v1015_v26, %v2864_v58  ;;  %v1042_v63 = vmul.f32 %v1023_v56, %v2866_v42  ;;  %v1041_v35 = vmul.f32 %v1019_v30, %v2868_v49  ;;  %v3024_v33 = vpop.f32.mrf.mxu1 }
 0x16e   : > { %v1043_v5 = vmul.f32 %v1027_v9, %v2870_v50  ;;  %v1048_v51 = vadd.f32 %v1032_v2, %v968_v27  ;;  %v1050_v3 = vadd.f32 %v1034_v23, %v970_v12  ;;  %v1096_v39 = vmul.f32 %v1079_v29, %v2872_v44 }
 0x16f   : > { %v1098_v32 = vmul.f32 %v1087_v62, %v2874_v8  ;;  %v3022_v22 = vpop.f32.mrf.mxu0  ;;  %v1097_v53 = vmul.f32 %v1083_v31, %v2876_v45  ;;  %v1099_v58 = vmul.f32 %v1091_v1, %v2878_v46  ;;  %v1104_v42 = vmul.f32 %v1079_v29, %v2880_v14  ;;  %v905_v8 = vpop.f32.mrf.mxu1 }
 0x170   : > { %v1106_v49 = vmul.f32 %v1087_v62, %v2882_v36  ;;  %v1049_v54 = vadd.f32 %v1033_v28, %v969_v4  ;;  %v1051_v50 = vadd.f32 %v1035_v10, %v971_v0  ;;  %v1105_v27 = vmul.f32 %v1083_v31, %v2884_v16 }
 0x171   : > { %v1107_v44 = vmul.f32 %v1091_v1, %v2886_v48  ;;  %v744_v26 = vpop.f32.mrf.mxu0  ;;  %v1056_v56 = vadd.f32 %v1040_v60, %v976_v43  ;;  %v1058_v30 = vadd.f32 %v1042_v63, %v978_v11  ;;  %v1057_v9 = vadd.f32 %v1041_v35, %v977_v17  ;;  %v3038_v29 = vpop.f32.mrf.mxu1  ;;  %v3283_v63 = vld [vmem:[#allocation23_spill] sm:$0xff] }
 0x172   : > { %v1059_v2 = vadd.f32 %v1043_v5, %v979_v57  ;;  %v1112_v12 = vadd.f32 %v1096_v39, %v1048_v51  ;;  %v1114_v45 = vadd.f32 %v1098_v32, %v1050_v3  ;;  %v1160_v46 = vmul.f32 %v2929_v7, %v2888_v13 }
 0x173   : > { %v1162_v14 = vmul.f32 %v2932_v34, %v2890_v15  ;;  %v3036_v36 = vpop.f32.mrf.mxu0  ;;  %v1113_v16 = vadd.f32 %v1097_v53, %v1049_v54  ;;  %v1115_v48 = vadd.f32 %v1099_v58, %v1051_v50  ;;  %v1120_v62 = vadd.f32 %v1104_v42, %v1056_v56  ;;  %v911_v0 = vpop.f32.mrf.mxu1  ;;  %v3290_v58 = vld [vmem:[#allocation33_spill] sm:$0xff] }
 0x174   : > { %v1122_v31 = vadd.f32 %v1106_v49, %v1058_v30  ;;  %v1121_v1 = vadd.f32 %v1105_v27, %v1057_v9  ;;  %v1123_v43 = vadd.f32 %v1107_v44, %v1059_v2  ;;  %v1161_v23 = vmul.f32 %v2935_v38, %v2892_v21  ;;  %v3281_v21 = vld [vmem:[#allocation17_spill] sm:$0xff]  ;;  %v3291_v2 = vld [vmem:[#allocation26_spill] sm:$0xff] }
 0x175   : > { %v1163_v4 = vmul.f32 %v2938_v6, %v2894_v40  ;;  %v750_v13 = vpop.f32.mrf.mxu0  ;;  %v1168_v15 = vmul.f32 %v2929_v7, %v2897_v52  ;;  %v1170_v11 = vmul.f32 %v2932_v34, %v2899_v61  ;;  %v1169_v17 = vmul.f32 %v2935_v38, %v2904_v19  ;;  %v3282_v40 = vld [vmem:[#allocation21_spill] sm:$0xff]  ;;  %v915_v51 = vpop.f32.mrf.mxu1  ;;  %v3284_v52 = vld [vmem:[#allocation15_spill] sm:$0xff]  ;;  %v3285_v7 = vld [vmem:[#allocation18_spill] sm:$0xff] }
 0x176   : > { %v1171_v57 = vmul.f32 %v2938_v6, %v2906_v20  ;;  %v1176_v28 = vadd.f32 %v1160_v46, %v1112_v12  ;;  %v1178_v10 = vadd.f32 %v1162_v14, %v1114_v45  ;;  %v1224_v60 = vmul.f32 %v3281_v21, %v2912_v55  ;;  %v3286_v61 = vld [vmem:[#allocation22_spill] sm:$0xff]  ;;  %v3287_v34 = vld [vmem:[#allocation24_spill] sm:$0xff]  ;;  %v3288_v19 = vld [vmem:[#allocation25_spill] sm:$0xff] }
 0x177   : > { %v1226_v35 = vmul.f32 %v3283_v63, %v3282_v40  ;;  %v754_v5 = vpop.f32.mrf.mxu0  ;;  %v1225_v3 = vmul.f32 %v3285_v7, %v3284_v52  ;;  %v1227_v39 = vmul.f32 %v3287_v34, %v3286_v61  ;;  %v1232_v38 = vmul.f32 %v3281_v21, %v3288_v19  ;;  %v3289_v20 = vld [vmem:[#allocation30_spill] sm:$0xff]  ;;  %v917_v54 = vpop.f32.mrf.mxu1  ;;  %v3292_v45 = vld [vmem:[#allocation27_spill] sm:$0xff]  ;;  %v3300_v19 = vld [vmem:[#allocation9_spill] sm:$0xff] }
 0x178   : > { %v1234_v6 = vmul.f32 %v3283_v63, %v3289_v20  ;;  %v1177_v32 = vadd.f32 %v1161_v23, %v1113_v16  ;;  %v1179_v53 = vadd.f32 %v1163_v4, %v1115_v48  ;;  %v1233_v55 = vmul.f32 %v3285_v7, %v2968_v47  ;;  %v3293_v63 = vld [vmem:[#allocation28_spill] sm:$0xff]  ;;  %v3297_v7 = vld [vmem:[#allocation34_spill] sm:$0xff] }
 0x179   : > { %v1235_v42 = vmul.f32 %v3287_v34, %v3290_v58  ;;  %v756_v49 = vpop.f32.mrf.mxu0  ;;  %v1184_v50 = vadd.f32 %v1168_v15, %v1120_v62  ;;  %v1186_v27 = vadd.f32 %v1170_v11, %v1122_v31  ;;  %v1185_v44 = vadd.f32 %v1169_v17, %v1121_v1  ;;  %v921_v16 = vpop.f32.mrf.mxu1  ;;  %v3294_v31 = vld [vmem:[#allocation29_spill] sm:$0xff] }
 0x17a   : > { %v1187_v56 = vadd.f32 %v1171_v57, %v1123_v43  ;;  %v1240_v30 = vadd.f32 %v1224_v60, %v1176_v28  ;;  %v1242_v9 = vadd.f32 %v1226_v35, %v1178_v10  ;;  %v1297_v12 = vmul.f32 %v3291_v2, %v744_v26  ;;  %v3296_v60 = vld [vmem:[#allocation35_spill] sm:$0xff] }
 0x17b   : > { %v1299_v46 = vmul.f32 %v3292_v45, %v905_v8  ;;  %v760_v14 = vpop.f32.mrf.mxu0  ;;  %v1241_v48 = vadd.f32 %v1225_v3, %v1177_v32  ;;  %v1243_v23 = vadd.f32 %v1227_v39, %v1179_v53  ;;  %v1248_v47 = vadd.f32 %v1232_v38, %v1184_v50  ;;  %v923_v15 = vpop.f32.mrf.mxu1 }
 0x17c   : > { %v1250_v4 = vadd.f32 %v1234_v6, %v1186_v27  ;;  %v1249_v21 = vadd.f32 %v1233_v55, %v1185_v44  ;;  %v1251_v40 = vadd.f32 %v1235_v42, %v1187_v56  ;;  %v1288_v62 = vmul.f32 %v3293_v63, %v3000_v37  ;;  %v3295_v37 = vld [vmem:[#allocation32_spill] sm:$0xff] }
 0x17d   : > { %v1290_v1 = vmul.f32 %v3294_v31, %v3002_v18  ;;  %v762_v43 = vpop.f32.mrf.mxu0  ;;  %v1289_v26 = vmul.f32 %v3291_v2, %v3012_v25  ;;  %v1291_v8 = vmul.f32 %v3292_v45, %v3014_v41  ;;  %v1296_v11 = vmul.f32 %v3293_v63, %v3022_v22  ;;  %v927_v52 = vpop.f32.mrf.mxu1  ;;  %v3298_v25 = vld [vmem:[#allocation31_spill] sm:$0xff]  ;;  %v3299_v22 = vld [vmem:[#allocation36_spill] sm:$0xff] }
 0x17e   : > { %v1298_v17 = vmul.f32 %v3294_v31, %v3024_v33  ;;  %v1313_v57 = vadd.f32 %v1297_v12, %v1249_v21  ;;  %v1315_v28 = vadd.f32 %v1299_v46, %v1251_v40  ;;  %v1353_v10 = vmul.f32 %v3295_v37, %v750_v13 }
 0x17f   : > { %v1355_v18 = vmul.f32 %v3296_v60, %v911_v0  ;;  %v766_v35 = vpop.f32.mrf.mxu0  ;;  %v1360_v3 = vmul.f32 %v3297_v7, %v754_v5  ;;  %v1362_v61 = vmul.f32 %v3298_v25, %v915_v51  ;;  %v1417_v41 = vmul.f32 %v2991_v24, %v762_v43  ;;  %v929_v0 = vpop.f32.mrf.mxu1 }
 0x180   : > { %v1419_v34 = vmul.f32 %v2994_v59, %v923_v15  ;;  %v1416_v39 = vmul.f32 %v3299_v22, %v760_v14  ;;  %v1418_v33 = vmul.f32 %v3300_v19, %v921_v16  ;;  %v1424_v38 = vmul.f32 %v3299_v22, %v766_v35 }
 0x181   : > { %v1426_v13 = vmul.f32 %v3300_v19, %v927_v52  ;;  %v768_v20 = vpop.f32.mrf.mxu0  ;;  %v1361_v6 = vmul.f32 %v3295_v37, %v756_v49  ;;  %v1363_v5 = vmul.f32 %v3296_v60, %v917_v54  ;;  %v1427_v32 = vmul.f32 %v2994_v59, %v929_v0 }
 0x182   : > { %v1425_v51 = vmul.f32 %v2991_v24, %v768_v20  ;;  %v1352_v53 = vmul.f32 %v3297_v7, %v3036_v36  ;;  %v1354_v55 = vmul.f32 %v3298_v25, %v3038_v29  ;;  %v1440_v58 = vadd.f32 %v1424_v38, %v1360_v3 }
 0x183   : > { %v1442_v42 = vadd.f32 %v1426_v13, %v1362_v61  ;;  %v1433_v50 = vadd.f32 %v1417_v41, %v1353_v10  ;;  %v1435_v27 = vadd.f32 %v1419_v34, %v1355_v18  ;;  %v1443_v56 = vadd.f32 %v1427_v32, %v1363_v5 }
 0x184   : > { %v1441_v44 = vadd.f32 %v1425_v51, %v1361_v6  ;;  %v1312_v2 = vadd.f32 %v1296_v11, %v1248_v47  ;;  %v1314_v49 = vadd.f32 %v1298_v17, %v1250_v4  ;;  %v1432_v12 = vadd.f32 %v1416_v39, %v1352_v53 }
 0x185   : > { %v1434_v54 = vadd.f32 %v1418_v33, %v1354_v55  ;;  %v1305_v45 = vadd.f32 %v1289_v26, %v1241_v48  ;;  %v1307_v24 = vadd.f32 %v1291_v8, %v1243_v23  ;;  %v1460_v59 = vmul.f32 %v1443_v56, %v1315_v28  ;;  %v3301_v48 = vld [vmem:[#allocation13_spill] sm:$0xff] }
 0x186   : > { %v1458_v46 = vmul.f32 %v1441_v44, %v1313_v57  ;;  %v1304_v14 = vadd.f32 %v1288_v62, %v1240_v30  ;;  %v1306_v16 = vadd.f32 %v1290_v1, %v1242_v9  ;;  %v1457_v36 = vmul.f32 %v1440_v58, %v1312_v2  ;;  %v3302_v62 = vld [vmem:[#allocation8_spill] sm:$0xff] }
 0x187   : > { %v1459_v21 = vmul.f32 %v1442_v42, %v1314_v49  ;;  %1706 = vmatprep.subr.mxu1 %v1460_v59  ;;  %v1450_v29 = vmul.f32 %v1433_v50, %v1305_v45  ;;  %v1452_v40 = vmul.f32 %v1435_v27, %v1307_v24  ;;  %v2114_v30 = vmov 1983009808  }
 0x188   : > { %1635 = vmatprep.subr.mxu0 %v1458_v46  ;;  %v1449_v63 = vmul.f32 %v1432_v12, %v1304_v14  ;;  %v1451_v31 = vmul.f32 %v1434_v54, %v1306_v16  ;;  %v1760_v9 = vunpack.c.l.s4 %v2114_v30 }
 0x189   : > { %1636 = vmatpush1.msra.mxu0 %v1457_v36  ;;  %1707 = vmatpush1.msra.mxu1 %v1459_v21 }
 0x18a   : > { %1637 = vmatprep.subr.mxu0 %v1450_v29  ;;  %1708 = vmatprep.subr.mxu1 %v1452_v40  ;;  %v1761_v23 = vunpack.c.0.s8 %v1760_v9 }
 0x18b   : > { %1638 = vmatpush1.msra.mxu0 %v1449_v63  ;;  %1709 = vmatpush1.msra.mxu1 %v1451_v31 }
 0x18c   : > { %1955 = vmatmul.mubr.msk.f32.vlgmr.msra.gmra.mxu0 %vm1461_vm1, %v3301_v48  ;;  %1956 = vmatmul.mubr.msk.f32.vlgmr.msra.gmra.mxu1 %vm1461_vm1, %v3301_v48  ;;  %v1764_v1 = vsub.s32 %v1761_v23, %v3302_v62 }
 0x20a   : > { %v1531_v47 = vpop.f32.mrf.mxu0  ;;  %v1602_v4 = vpop.f32.mrf.mxu1 }
 0x20c   : > { %v1533_v43 = vpop.f32.mrf.mxu0  ;;  %v1604_v15 = vpop.f32.mrf.mxu1 }
 0x20d   : > { %v1757_v26 = vcombine.low %v1531_v47, %v1533_v43  ;;  %v1758_v8 = vcombine.low %v1602_v4, %v1604_v15 }
 0x20f   : > { %v1765_v11 = vrot.slane %v1757_v26, %v1764_v1  ;;  %v1772_v17 = vrot.slane %v1758_v8, %v1764_v1 }
 0x211   : > { %v1773_v57 = vcombine.low %v1765_v11, %v1772_v17 }
 0x213   : > { %1793 = vst [vmem:[%s188_s6] sm:$0xff] %v1773_v57 }
 0x24c   : > { %v1673_v28 = vpop.f32.mrf.mxu0  ;;  %v1744_v37 = vpop.f32.mrf.mxu1 }
 0x24e   : > { %v1675_v10 = vpop.f32.mrf.mxu0  ;;  %v1746_v60 = vpop.f32.mrf.mxu1 }
 0x24f   : > { %v1774_v18 = vcombine.low %v1673_v28, %v1675_v10  ;;  %v1775_v35 = vcombine.low %v1744_v37, %v1746_v60 }
 0x251   : > { %v1782_v52 = vrot.slane %v1774_v18, %v1764_v1  ;;  %v1789_v7 = vrot.slane %v1775_v35, %v1764_v1 }
 0x253   : > { %v1790_v3 = vcombine.low %v1782_v52, %v1789_v7 }
 0x255   : > { %1794 = vst [vmem:[%s188_s6 + $0x8] sm:$0xff] %v1790_v3 }
 0x256   : > { %2056 = shalt.err (!%p2053_p10)
}
 0x257   : > { %s2057_s30 = scalar_lea.hbm %s1808_s22, 256  ;;  %s2061_s10 = scalar_lea.hbm %s3144_s3, 512 }
 0x258   : > { %p2058_p1 = scmp.ne.s32.totalorder %s1808_s22, %s2057_s30  ;;  %p2062_p0 = scmp.lt.s32.totalorder %s1808_s22, %s3144_s3 }
 0x259   : > { %p2063_p2 = scmp.lt.s32.totalorder %s2061_s10, %s2057_s30 }
 0x25a   : > { %p2059_p3 = pnand %p2058_p1, %p3303_p12 }
 0x25b   : > { %p2064_p6 = por %p2063_p2, %p2062_p0 }
 0x25c   : > { %p2060_p9 = pneg %p2059_p3 }
 0x25e   : > { %p2065_p11 = pnand %p2064_p6, %p2060_p9 }
 0x260   : > { %2068 = shalt.err (!%p2065_p11)
}
 0x261   : > { %1966 = dma.vmem_to_hbm [thread:$0]  (%p3303_p12), %s1811_s8, 256, %s1808_s22, %s1796_s26  }
 0x262 PF: > { %s1822_s4 = sand.u32 1, %s2095_s12   ;;  %p3304_p13 = scmp.ne.s32.totalorder %s3198_s25, 0 }
 0x263   : > { %p3305_p4 = scmp.ge.s32.totalorder %s2107_s15, 2  ;;  %s1823_s17 = scalar_lea.sflag [#allocation4], %s1822_s4 }
 0x265   : > { %p1973_p5 = pnand %p3305_p4, %p3304_p13 }
 0x267   : > { %p1974_p7 = pneg %p1973_p5 }
 0x269   : > { %2090 = dma.done.wait (%p1974_p7), %s1823_s17, 256  }
 0x26a   : > { %2092 = vsyncadd (%p1974_p7), %s1823_s17, 4294967040  ;;  %p16_p8 = scmp.ge.s32.totalorder %s2161_s18, 4   ;;  %s3306_s12 = smov %s2099_s13 }
 0x26b   : > { %s3307_s13 = smov %s2103_s14  ;;  %s3308_s14 = smov %s2173_s21 }
 0x26c   : > { %s3309_s15 = smov %s2161_s18  ;;  %18 = sbr.rel (!%p16_p8) target bundleno = 5 (0x5), region = 77 }
 0x271   :  { %1828 = vsyncpa [#allocation3], 1 }
 0x272   :  { %1830 = vsyncpa [#allocation3 + $0x1], 1 }
 0x273   :  { %1831 = vsyncpa [#allocation4], 1 }
 0x274   :  { %1833 = vsyncpa [#allocation4 + $0x1], 1 }

</bundles_post_ra>
